<compile_context>
chip_gen: v7x
topology: tpu7x:2x2x1
jax: 0.10.0
libtpu: 0.0.40
codegen_flags: <defaults>
</compile_context>

<pallas_src>
import functools

import numpy as np
import jax
import jax.numpy as jnp
from jax import lax
from jax.experimental import pallas as pl
from jax.experimental.pallas import tpu as pltpu


def _focal_kernel(cls_ref, reg_ref, anc_ref, ann_ref, annT_ref, out_ref, acc_ref,
                  *, a_total):
    f32 = jnp.float32
    alpha = 0.25
    t = pl.program_id(1)
    n_t = pl.num_programs(1)
    C, TA = cls_ref.shape[1], cls_ref.shape[2]
    M = ann_ref.shape[1]

    @pl.when(t == 0)
    def _():
        acc_ref[...] = jnp.zeros_like(acc_ref)

    classification = jnp.clip(cls_ref[0], 1e-4, 1.0 - 1e-4)      # (C, TA)
    regression = reg_ref[0]                                       # (5, TA)
    anc = anc_ref[...]                                            # (12, TA)
    ann = ann_ref[0]                                              # (M, 8)
    annT = annT_ref[0]                                            # (8, M)

    # Augmented anchor rows (precomputed in the wrapper, constant over the grid).
    ax1, ay1, ax2, ay2 = anc[0:1], anc[1:2], anc[2:3], anc[3:4]
    aang = anc[4:5]
    a_cx, a_cy = anc[5:6], anc[6:7]
    area_a = anc[7:8]
    asin, acos = anc[8:9], anc[9:10]
    inv_aw, inv_ah = anc[10:11], anc[11:12]                       # all (1, TA)

    # Augmented annotation columns (M on sublanes -> natural (M, 1) broadcasts).
    bx1, by1, bx2, by2 = ann[:, 0:1], ann[:, 1:2], ann[:, 2:3], ann[:, 3:4]
    bang = ann[:, 4:5]
    blabel = ann[:, 5:6]
    bsin, bcos = ann[:, 6:7], ann[:, 7:8]                         # all (M, 1)

    valid_ann = blabel != -1.0                                    # (M, 1)

    # Padded anchors (anchor-axis tiling) must not contribute anything.
    lane = lax.broadcasted_iota(jnp.int32, (1, TA), 1)
    valid_anc = (t * TA + lane) < a_total                         # (1, TA)

    # ---- arIoU (M, TA): IoU * sign(d) * sin(d), no per-pair transcendental ----
    area_b = (bx2 - bx1) * (by2 - by1)                            # (M, 1)
    iw = jnp.maximum(jnp.minimum(ax2, bx2) - jnp.maximum(ax1, bx1), 0.0)
    ih = jnp.maximum(jnp.minimum(ay2, by2) - jnp.maximum(ay1, by1), 0.0)
    inter = iw * ih
    ua = jnp.maximum(area_a + area_b - inter, 1e-8)
    iou = inter / ua                                              # (M, TA)
    s = asin * bcos - acos * bsin                                 # sin(aang - bang)
    d = aang - bang
    ariou = iou * jnp.where(d >= 0.0, s, -s)                      # == cos(|d| - pi/2)

    NEG = -1e30
    iou_m = jnp.where(valid_ann, ariou, NEG)
    iou_max = jnp.max(iou_m, axis=0, keepdims=True)               # (1, TA)

    # First-occurrence argmax over annotations -> one-hot (M, TA).
    m_iota = lax.broadcasted_iota(jnp.int32, (M, TA), 0)
    idx = jnp.min(jnp.where(iou_m == iou_max, m_iota, M), axis=0, keepdims=True)
    onehot_m = (m_iota == idx).astype(f32)                        # (M, TA)

    # Gather the assigned-annotation columns with a single MXU matmul.
    gathered = jnp.dot(annT, onehot_m, preferred_element_type=f32)  # (8, TA)
    gx1, gy1, gx2, gy2 = gathered[0:1], gathered[1:2], gathered[2:3], gathered[3:4]
    gang = gathered[4:5]
    gsin, gcos = gathered[6:7], gathered[7:8]

    pos = (iou_max >= 0.5) & valid_anc                            # (1, TA)
    neg = iou_max < 0.4
    num_pos_tile = jnp.sum(jnp.where(pos, 1.0, 0.0))

    # ---- classification focal loss (C, TA), single-log CE ----
    cls_idx = gang.astype(jnp.int32)                              # .long() truncation
    c_iota = lax.broadcasted_iota(jnp.int32, (C, TA), 0)
    t_is1 = pos & (c_iota == cls_idx)                             # target == 1
    t_used = (pos | neg) & valid_anc                              # target != -1 (real anchors)

    p_sel = jnp.where(t_is1, classification, 1.0 - classification)
    alpha_factor = jnp.where(t_is1, alpha, 1.0 - alpha)
    fw = 1.0 - p_sel                                              # == where(t==1, 1-p, p)
    cls_loss = jnp.where(t_used, alpha_factor * fw * fw * (-jnp.log(p_sel)), 0.0)
    cls_sum_tile = jnp.sum(cls_loss)

    # ---- regression smooth-L1 (positives only) ----
    g_w = gx2 - gx1
    g_h = gy2 - gy1
    g_cx = gx1 + 0.5 * g_w          # centers use unclamped widths (as in reference)
    g_cy = gy1 + 0.5 * g_h
    g_w = jnp.maximum(g_w, 1.0)
    g_h = jnp.maximum(g_h, 1.0)

    t_dx = (g_cx - a_cx) * inv_aw * 10.0                          # / 0.1
    t_dy = (g_cy - a_cy) * inv_ah * 10.0
    t_dw = jnp.log(g_w * inv_aw) * 5.0                            # / 0.2
    t_dh = jnp.log(g_h * inv_ah) * 5.0
    # tan(gang - aang) from the gathered sin/cos (no in-kernel sin/cos/tan).
    t_da = (gsin * acos - gcos * asin) / (gcos * acos + gsin * asin)

    def smooth_l1_sum(t_row, r_row):
        diff = jnp.abs(t_row - r_row)
        l = jnp.where(diff <= 1.0 / 9.0, 4.5 * diff * diff, diff - 0.5 / 9.0)
        return jnp.sum(jnp.where(pos, l, 0.0))

    reg_sum_tile = (smooth_l1_sum(t_dx, regression[0:1])
                    + smooth_l1_sum(t_dy, regression[1:2])
                    + smooth_l1_sum(t_dw, regression[2:3])
                    + smooth_l1_sum(t_dh, regression[3:4])
                    + smooth_l1_sum(t_da, regression[4:5]))

    # Accumulate per-batch sums across anchor tiles (rows: num_pos, cls, reg).
    row3 = lax.broadcasted_iota(jnp.int32, (3, 128), 0)
    acc_ref[...] += jnp.where(row3 == 0, num_pos_tile,
                              jnp.where(row3 == 1, cls_sum_tile, reg_sum_tile))

    @pl.when(t == n_t - 1)
    def _():
        acc = acc_ref[...]
        num_pos = acc[0:1, :]
        cls_sum = acc[1:2, :]
        reg_sum = acc[2:3, :]
        num_valid = jnp.sum(jnp.where(valid_ann, 1.0, 0.0))
        has_ann = num_valid > 0.0
        cls_out = cls_sum / jnp.maximum(num_pos, 1.0)
        reg_out = jnp.where(num_pos > 0.0,
                            reg_sum / jnp.maximum(num_pos * 5.0, 1.0), 0.0)
        cls_out = jnp.where(has_ann, cls_out, 0.0)
        reg_out = jnp.where(has_ann, reg_out, 0.0)
        row2 = lax.broadcasted_iota(jnp.int32, (1, 2, 128), 1)
        out_ref[...] = jnp.where(row2 == 0,
                                 jnp.broadcast_to(cls_out, (1, 2, 128)),
                                 jnp.broadcast_to(reg_out, (1, 2, 128)))


def focal_loss(classifications, regressions, anchors, annotations, *,
               fused=False, max_tile_a=4096):
    """Pallas equivalent of FocalLoss(fused=fused).forward(...)."""
    if fused:
        # reference: anchors.unsqueeze(1).repeat(1, 6, 1, 1).flatten(1, 2)
        B0, A0, D0 = anchors.shape
        anchors = jnp.tile(anchors[:, None], (1, 6, 1, 1)).reshape(B0, 6 * A0, D0)

    classifications = classifications.astype(jnp.float32)
    regressions = regressions.astype(jnp.float32)
    anchors = anchors.astype(jnp.float32)
    annotations = annotations.astype(jnp.float32)

    B, A, C = classifications.shape
    M = annotations.shape[1]

    # ---- anchor-only precompute (anchors[0] only, like the reference) ----
    a0 = anchors[0]                                               # (A, 5)
    ax1, ay1, ax2, ay2, aang = a0[:, 0], a0[:, 1], a0[:, 2], a0[:, 3], a0[:, 4]
    a_w = ax2 - ax1
    a_h = ay2 - ay1
    anc_aug = jnp.stack(
        [ax1, ay1, ax2, ay2, aang,
         ax1 + 0.5 * a_w, ay1 + 0.5 * a_h, a_w * a_h,
         jnp.sin(aang), jnp.cos(aang), 1.0 / a_w, 1.0 / a_h], axis=0)  # (12, A)

    # ---- annotations with precomputed sin/cos of the angle column ----
    bang = annotations[..., 4]
    ann_aug = jnp.concatenate(
        [annotations[..., :6], jnp.sin(bang)[..., None], jnp.cos(bang)[..., None]],
        axis=-1)                                                  # (B, M, 8)
    annT_aug = jnp.transpose(ann_aug, (0, 2, 1))                  # (B, 8, M) for MXU gather

    # ---- anchor-axis tiling (A maps to lanes inside the kernel) ----
    if A <= max_tile_a:
        tile_a = A
    else:
        tile_a = max(128, (max_tile_a // 128) * 128)
    a_pad = ((A + tile_a - 1) // tile_a) * tile_a
    n_t = a_pad // tile_a
    if a_pad != A:
        pad = a_pad - A
        classifications = jnp.pad(classifications, ((0, 0), (0, pad), (0, 0)))
        regressions = jnp.pad(regressions, ((0, 0), (0, pad), (0, 0)))
        anc_aug = jnp.pad(anc_aug, ((0, 0), (0, pad)), mode="edge")

    cls_t = jnp.transpose(classifications, (0, 2, 1))             # (B, C, A_pad)
    reg_t = jnp.transpose(regressions, (0, 2, 1))                 # (B, 5, A_pad)

    out = pl.pallas_call(
        functools.partial(_focal_kernel, a_total=A),
        out_shape=jax.ShapeDtypeStruct((B, 2, 128), jnp.float32),
        grid_spec=pltpu.PrefetchScalarGridSpec(
            num_scalar_prefetch=0,
            grid=(B, n_t),
            in_specs=[
                pl.BlockSpec((1, C, tile_a), lambda b, t: (b, 0, t)),
                pl.BlockSpec((1, 5, tile_a), lambda b, t: (b, 0, t)),
                pl.BlockSpec((12, tile_a), lambda b, t: (0, t)),
                pl.BlockSpec((1, M, 8), lambda b, t: (b, 0, 0)),
                pl.BlockSpec((1, 8, M), lambda b, t: (b, 0, 0)),
            ],
            out_specs=pl.BlockSpec((1, 2, 128), lambda b, t: (b, 0, 0)),
            scratch_shapes=[pltpu.VMEM((3, 128), jnp.float32)],
        ),
        compiler_params=pltpu.CompilerParams(
            dimension_semantics=("parallel", "arbitrary")),
    )(cls_t, reg_t, anc_aug, ann_aug, annT_aug)

    cls_per_batch = out[:, 0, 0]
    reg_per_batch = out[:, 1, 0]
    # torch.stack(losses).mean(dim=0, keepdim=True) -> shape (1,)
    return (jnp.mean(cls_per_batch, keepdims=True),
            jnp.mean(reg_per_batch, keepdims=True))


def _ref_focal_loss(classifications, regressions, anchors, annotations):
    """Pure numpy re-implementation of the PyTorch reference (for validation)."""
    cls_all = np.asarray(classifications, np.float32)
    reg_all = np.asarray(regressions, np.float32)
    anchors = np.asarray(anchors, np.float32)
    annotations = np.asarray(annotations, np.float32)
    alpha, gamma = 0.25, 2.0
    B = cls_all.shape[0]
    anchor = anchors[0]
    a_w = anchor[:, 2] - anchor[:, 0]
    a_h = anchor[:, 3] - anchor[:, 1]
    a_cx = anchor[:, 0] + 0.5 * a_w
    a_cy = anchor[:, 1] + 0.5 * a_h
    a_ang = anchor[:, 4]
    cls_losses, reg_losses = [], []
    for j in range(B):
        classification = np.clip(cls_all[j], 1e-4, 1.0 - 1e-4)
        regression = reg_all[j]
        bbox = annotations[j]
        bbox = bbox[bbox[:, 5] != -1]
        if bbox.shape[0] == 0:
            cls_losses.append(0.0)
            reg_losses.append(0.0)
            continue
        a = anchor[:, :5]
        b = bbox[:, :5]
        area = (b[:, 2] - b[:, 0]) * (b[:, 3] - b[:, 1])
        iw = np.minimum(a[:, 2:3], b[None, :, 2]) - np.maximum(a[:, 0:1], b[None, :, 0])
        ih = np.minimum(a[:, 3:4], b[None, :, 3]) - np.maximum(a[:, 1:2], b[None, :, 1])
        iw = np.clip(iw, 0, None)
        ih = np.clip(ih, 0, None)
        ua = ((a[:, 2] - a[:, 0]) * (a[:, 3] - a[:, 1]))[:, None] + area[None, :] - iw * ih
        ua = np.clip(ua, 1e-8, None)
        IoU = iw * ih / ua
        arIoU = IoU * np.cos(np.abs(a[:, 4:5] - b[None, :, 4]) - np.pi / 2)
        IoU_max = arIoU.max(axis=1)
        IoU_argmax = arIoU.argmax(axis=1)
        targets = np.ones_like(classification) * -1.0
        targets[IoU_max < 0.4, :] = 0.0
        positive = IoU_max >= 0.5
        num_pos = positive.sum()
        assigned = bbox[IoU_argmax]
        targets[positive, :] = 0.0
        targets[positive, assigned[positive, 4].astype(np.int64)] = 1.0
        alpha_factor = np.where(targets == 1.0, alpha, 1.0 - alpha)
        focal_weight = np.where(targets == 1.0, 1.0 - classification, classification)
        focal_weight = alpha_factor * focal_weight ** gamma
        ce = -(targets * np.log(classification) + (1.0 - targets) * np.log(1.0 - classification))
        cls_loss = np.where(targets != -1.0, focal_weight * ce, 0.0)
        cls_losses.append(cls_loss.sum() / max(float(num_pos), 1.0))
        if num_pos > 0:
            asg = assigned[positive]
            aw = a_w[positive]; ah = a_h[positive]
            acx = a_cx[positive]; acy = a_cy[positive]; aang = a_ang[positive]
            gw = asg[:, 2] - asg[:, 0]
            gh = asg[:, 3] - asg[:, 1]
            gcx = asg[:, 0] + 0.5 * gw
            gcy = asg[:, 1] + 0.5 * gh
            gang = asg[:, 4]
            gw = np.clip(gw, 1, None)
            gh = np.clip(gh, 1, None)
            tdx = (gcx - acx) / aw
            tdy = (gcy - acy) / ah
            tdw = np.log(gw / aw)
            tdh = np.log(gh / ah)
            tda = np.tan(gang - aang)
            t = np.stack([tdx, tdy, tdw, tdh, tda]).T / np.array([[0.1, 0.1, 0.2, 0.2, 1.0]])
            diff = np.abs(t - regression[positive])
            rl = np.where(diff <= 1.0 / 9.0, 0.5 * 9.0 * diff ** 2, diff - 0.5 / 9.0)
            reg_losses.append(float(rl.mean()))
        else:
            reg_losses.append(0.0)
    return float(np.mean(cls_losses)), float(np.mean(reg_losses))


if __name__ == "__main__":
    def build_anchors(nx, ny, sizes, stride=16.0):
        xs = np.arange(nx, dtype=np.float32) * stride + stride / 2.0
        ys = np.arange(ny, dtype=np.float32) * stride + stride / 2.0
        cx, cy = np.meshgrid(xs, ys, indexing="ij")
        cx = cx.reshape(-1)
        cy = cy.reshape(-1)
        boxes = []
        for s in sizes:
            h = s / 2.0
            boxes.append(np.stack([cx - h, cy - h, cx + h, cy + h,
                                   np.zeros_like(cx)], axis=1))
        return np.concatenate(boxes, axis=0).astype(np.float32)

    def run_case(seed, anchor_np, B, C, M, matches, max_tile_a):
        key = jax.random.PRNGKey(seed)
        k1, k2, k3 = jax.random.split(key, 3)
        A = anchor_np.shape[0]
        anchors = jnp.broadcast_to(jnp.asarray(anchor_np)[None], (B, A, 5)).astype(jnp.float32)
        classifications = jax.nn.sigmoid(jax.random.normal(k1, (B, A, C), jnp.float32))
        regressions = 0.1 * jax.random.normal(k2, (B, A, 5), jnp.float32)

        jitter = np.asarray(0.3 * jax.random.normal(k3, (B, M, 4), jnp.float32))
        ann = np.full((B, M, 6), -1.0, np.float32)
        for bidx, aidxs in matches.items():
            for i, aidx in enumerate(aidxs):
                ann[bidx, i, :4] = anchor_np[aidx, :4] + jitter[bidx, i]
                ann[bidx, i, 4] = 1.3 + 0.05 * i   # angle column (also class idx -> 1)
                ann[bidx, i, 5] = 1.0              # valid label
        annotations = jnp.asarray(ann)

        cls_l, reg_l = focal_loss(classifications, regressions, anchors, annotations,
                                  fused=False, max_tile_a=max_tile_a)
        cls_l, reg_l = jax.block_until_ready((cls_l, reg_l))
        ref_cls, ref_reg = _ref_focal_loss(classifications, regressions, anchors, annotations)
        np.testing.assert_allclose(np.asarray(cls_l)[0], ref_cls, rtol=2e-3, atol=2e-3)
        np.testing.assert_allclose(np.asarray(reg_l)[0], ref_reg, rtol=2e-3, atol=2e-3)

    # Case 1: single anchor tile (B=2, A=64, C=8, M=8).
    run_case(0, build_anchors(8, 8, [12.0]), B=2, C=8, M=8,
             matches={0: [0, 9, 20], 1: [5, 33, 50, 63]}, max_tile_a=4096)

    # Case 2: tiled + padded anchor axis (A=320 -> 3 tiles of 128), one empty batch.
    run_case(1, build_anchors(8, 8, [8.0, 12.0, 16.0, 20.0, 24.0]), B=3, C=8, M=8,
             matches={0: [0, 77, 150, 260], 1: [12, 199, 305]}, max_tile_a=128)

    print("KERNEL_OK")
</pallas_src>

<mosaic_0001>
module attributes {stable_mosaic.version = 11 : i64} {
  func.func @_focal_kernel(%arg0: i32, %arg1: i32, %arg2: memref<1x8x64xf32, #tpu.memory_space<vmem>>, %arg3: memref<1x5x64xf32, #tpu.memory_space<vmem>>, %arg4: memref<12x64xf32, #tpu.memory_space<vmem>>, %arg5: memref<1x8x8xf32, #tpu.memory_space<vmem>>, %arg6: memref<1x8x8xf32, #tpu.memory_space<vmem>>, %arg7: memref<1x2x128xf32, #tpu.memory_space<vmem>>, %arg8: memref<3x128xf32, #tpu.memory_space<vmem>>) attributes {dimension_semantics = [#tpu.dimension_semantics<parallel>, #tpu.dimension_semantics<arbitrary>], iteration_bounds = array<i64: 2, 1>, scalar_prefetch = 0 : i64, scratch_operands = 1 : i64, tpu.core_type = #tpu.core_type<tc>, window_params = [{transform_indices = @transform_0, window_bounds = array<i64: 1, 8, 64>}, {transform_indices = @transform_1, window_bounds = array<i64: 1, 5, 64>}, {transform_indices = @transform_2, window_bounds = array<i64: 12, 64>}, {transform_indices = @transform_3, window_bounds = array<i64: 1, 8, 8>}, {transform_indices = @transform_4, window_bounds = array<i64: 1, 8, 8>}, {transform_indices = @transform_5, window_bounds = array<i64: 1, 2, 128>}]} {
    %c0_i32 = arith.constant 0 : i32
    %0 = arith.cmpi eq, %arg1, %c0_i32 : i32
    %1 = arith.extui %0 : i1 to i32
    %c0_i32_0 = arith.constant 0 : i32
    %2 = arith.cmpi ne, %1, %c0_i32_0 : i32
    scf.if %2 {
      %cst_78 = arith.constant 0.000000e+00 : f32
      %296 = vector.broadcast %cst_78 : f32 to vector<3x128xf32>
      %c0_79 = arith.constant 0 : index
      %c0_80 = arith.constant 0 : index
      %297 = vector.load %arg8[%c0_79, %c0_80] : memref<3x128xf32, #tpu.memory_space<vmem>>, vector<3x128xf32>
      tpu.vector_store %arg8[%c0_79, %c0_80], %296 {strides = array<i32>} : memref<3x128xf32, #tpu.memory_space<vmem>>, vector<3x128xf32>,
    } else {
    }
    %c0 = arith.constant 0 : index
    %c0_1 = arith.constant 0 : index
    %c0_2 = arith.constant 0 : index
    %3 = vector.load %arg2[%c0, %c0_1, %c0_2] : memref<1x8x64xf32, #tpu.memory_space<vmem>>, vector<1x8x64xf32>
    %4 = vector.shape_cast %3 : vector<1x8x64xf32> to vector<8x64xf32>
    %cst = arith.constant 9.99999974E-5 : f32
    %cst_3 = arith.constant 0.999899983 : f32
    %5 = vector.broadcast %cst : f32 to vector<8x64xf32>
    %6 = arith.maximumf %5, %4 : vector<8x64xf32>
    %7 = vector.broadcast %cst_3 : f32 to vector<8x64xf32>
    %8 = arith.minimumf %7, %6 : vector<8x64xf32>
    %c0_4 = arith.constant 0 : index
    %c0_5 = arith.constant 0 : index
    %c0_6 = arith.constant 0 : index
    %9 = vector.load %arg3[%c0_4, %c0_5, %c0_6] : memref<1x5x64xf32, #tpu.memory_space<vmem>>, vector<1x5x64xf32>
    %10 = vector.shape_cast %9 : vector<1x5x64xf32> to vector<5x64xf32>
    %c0_7 = arith.constant 0 : index
    %c0_8 = arith.constant 0 : index
    %11 = vector.load %arg4[%c0_7, %c0_8] : memref<12x64xf32, #tpu.memory_space<vmem>>, vector<12x64xf32>
    %c0_9 = arith.constant 0 : index
    %c0_10 = arith.constant 0 : index
    %c0_11 = arith.constant 0 : index
    %12 = vector.load %arg5[%c0_9, %c0_10, %c0_11] : memref<1x8x8xf32, #tpu.memory_space<vmem>>, vector<1x8x8xf32>
    %13 = vector.shape_cast %12 : vector<1x8x8xf32> to vector<8x8xf32>
    %c0_12 = arith.constant 0 : index
    %c0_13 = arith.constant 0 : index
    %c0_14 = arith.constant 0 : index
    %14 = vector.load %arg6[%c0_12, %c0_13, %c0_14] : memref<1x8x8xf32, #tpu.memory_space<vmem>>, vector<1x8x8xf32>
    %15 = vector.shape_cast %14 : vector<1x8x8xf32> to vector<8x8xf32>
    %16 = vector.extract_strided_slice %11 {offsets = [0, 0], sizes = [1, 64], strides = [1, 1]} : vector<12x64xf32> to vector<1x64xf32>
    %17 = vector.extract_strided_slice %11 {offsets = [1, 0], sizes = [1, 64], strides = [1, 1]} : vector<12x64xf32> to vector<1x64xf32>
    %18 = vector.extract_strided_slice %11 {offsets = [2, 0], sizes = [1, 64], strides = [1, 1]} : vector<12x64xf32> to vector<1x64xf32>
    %19 = vector.extract_strided_slice %11 {offsets = [3, 0], sizes = [1, 64], strides = [1, 1]} : vector<12x64xf32> to vector<1x64xf32>
    %20 = vector.extract_strided_slice %11 {offsets = [4, 0], sizes = [1, 64], strides = [1, 1]} : vector<12x64xf32> to vector<1x64xf32>
    %21 = vector.extract_strided_slice %11 {offsets = [5, 0], sizes = [1, 64], strides = [1, 1]} : vector<12x64xf32> to vector<1x64xf32>
    %22 = vector.extract_strided_slice %11 {offsets = [6, 0], sizes = [1, 64], strides = [1, 1]} : vector<12x64xf32> to vector<1x64xf32>
    %23 = vector.extract_strided_slice %11 {offsets = [7, 0], sizes = [1, 64], strides = [1, 1]} : vector<12x64xf32> to vector<1x64xf32>
    %24 = vector.extract_strided_slice %11 {offsets = [8, 0], sizes = [1, 64], strides = [1, 1]} : vector<12x64xf32> to vector<1x64xf32>
    %25 = vector.extract_strided_slice %11 {offsets = [9, 0], sizes = [1, 64], strides = [1, 1]} : vector<12x64xf32> to vector<1x64xf32>
    %26 = vector.extract_strided_slice %11 {offsets = [10, 0], sizes = [1, 64], strides = [1, 1]} : vector<12x64xf32> to vector<1x64xf32>
    %27 = vector.extract_strided_slice %11 {offsets = [11, 0], sizes = [1, 64], strides = [1, 1]} : vector<12x64xf32> to vector<1x64xf32>
    %28 = vector.extract_strided_slice %13 {offsets = [0, 0], sizes = [8, 1], strides = [1, 1]} : vector<8x8xf32> to vector<8x1xf32>
    %29 = vector.extract_strided_slice %13 {offsets = [0, 1], sizes = [8, 1], strides = [1, 1]} : vector<8x8xf32> to vector<8x1xf32>
    %30 = vector.extract_strided_slice %13 {offsets = [0, 2], sizes = [8, 1], strides = [1, 1]} : vector<8x8xf32> to vector<8x1xf32>
    %31 = vector.extract_strided_slice %13 {offsets = [0, 3], sizes = [8, 1], strides = [1, 1]} : vector<8x8xf32> to vector<8x1xf32>
    %32 = vector.extract_strided_slice %13 {offsets = [0, 4], sizes = [8, 1], strides = [1, 1]} : vector<8x8xf32> to vector<8x1xf32>
    %33 = vector.extract_strided_slice %13 {offsets = [0, 5], sizes = [8, 1], strides = [1, 1]} : vector<8x8xf32> to vector<8x1xf32>
    %34 = vector.extract_strided_slice %13 {offsets = [0, 6], sizes = [8, 1], strides = [1, 1]} : vector<8x8xf32> to vector<8x1xf32>
    %35 = vector.extract_strided_slice %13 {offsets = [0, 7], sizes = [8, 1], strides = [1, 1]} : vector<8x8xf32> to vector<8x1xf32>
    %cst_15 = arith.constant -1.000000e+00 : f32
    %36 = vector.broadcast %cst_15 : f32 to vector<8x1xf32>
    %37 = arith.cmpf one, %33, %36 : vector<8x1xf32>
    %38 = tpu.iota {dimensions = array<i32: 1>} : vector<1x64xi32>
    %c64_i32 = arith.constant 64 : i32
    %39 = arith.muli %arg1, %c64_i32 : i32
    %40 = vector.broadcast %39 : i32 to vector<1x64xi32>
    %41 = arith.addi %40, %38 : vector<1x64xi32>
    %c64_i32_16 = arith.constant 64 : i32
    %42 = vector.broadcast %c64_i32_16 : i32 to vector<1x64xi32>
    %43 = arith.cmpi slt, %41, %42 : vector<1x64xi32>
    %44 = arith.subf %30, %28 : vector<8x1xf32>
    %45 = arith.subf %31, %29 : vector<8x1xf32>
    %46 = arith.mulf %44, %45 : vector<8x1xf32>
    %47 = vector.broadcast %18 : vector<1x64xf32> to vector<8x64xf32>
    %48 = vector.broadcast %30 : vector<8x1xf32> to vector<8x64xf32>
    %49 = arith.minimumf %47, %48 : vector<8x64xf32>
    %50 = vector.broadcast %16 : vector<1x64xf32> to vector<8x64xf32>
    %51 = vector.broadcast %28 : vector<8x1xf32> to vector<8x64xf32>
    %52 = arith.maximumf %50, %51 : vector<8x64xf32>
    %53 = arith.subf %49, %52 : vector<8x64xf32>
    %cst_17 = arith.constant 0.000000e+00 : f32
    %54 = vector.broadcast %cst_17 : f32 to vector<8x64xf32>
    %55 = arith.maximumf %53, %54 : vector<8x64xf32>
    %56 = vector.broadcast %19 : vector<1x64xf32> to vector<8x64xf32>
    %57 = vector.broadcast %31 : vector<8x1xf32> to vector<8x64xf32>
    %58 = arith.minimumf %56, %57 : vector<8x64xf32>
    %59 = vector.broadcast %17 : vector<1x64xf32> to vector<8x64xf32>
    %60 = vector.broadcast %29 : vector<8x1xf32> to vector<8x64xf32>
    %61 = arith.maximumf %59, %60 : vector<8x64xf32>
    %62 = arith.subf %58, %61 : vector<8x64xf32>
    %cst_18 = arith.constant 0.000000e+00 : f32
    %63 = vector.broadcast %cst_18 : f32 to vector<8x64xf32>
    %64 = arith.maximumf %62, %63 : vector<8x64xf32>
    %65 = arith.mulf %55, %64 : vector<8x64xf32>
    %66 = vector.broadcast %23 : vector<1x64xf32> to vector<8x64xf32>
    %67 = vector.broadcast %46 : vector<8x1xf32> to vector<8x64xf32>
    %68 = arith.addf %66, %67 : vector<8x64xf32>
    %69 = arith.subf %68, %65 : vector<8x64xf32>
    %cst_19 = arith.constant 9.99999993E-9 : f32
    %70 = vector.broadcast %cst_19 : f32 to vector<8x64xf32>
    %71 = arith.maximumf %69, %70 : vector<8x64xf32>
    %72 = arith.divf %65, %71 : vector<8x64xf32>
    %73 = vector.broadcast %24 : vector<1x64xf32> to vector<8x64xf32>
    %74 = vector.broadcast %35 : vector<8x1xf32> to vector<8x64xf32>
    %75 = arith.mulf %73, %74 : vector<8x64xf32>
    %76 = vector.broadcast %25 : vector<1x64xf32> to vector<8x64xf32>
    %77 = vector.broadcast %34 : vector<8x1xf32> to vector<8x64xf32>
    %78 = arith.mulf %76, %77 : vector<8x64xf32>
    %79 = arith.subf %75, %78 : vector<8x64xf32>
    %80 = vector.broadcast %20 : vector<1x64xf32> to vector<8x64xf32>
    %81 = vector.broadcast %32 : vector<8x1xf32> to vector<8x64xf32>
    %82 = arith.subf %80, %81 : vector<8x64xf32>
    %cst_20 = arith.constant 0.000000e+00 : f32
    %83 = vector.broadcast %cst_20 : f32 to vector<8x64xf32>
    %84 = arith.cmpf oge, %82, %83 : vector<8x64xf32>
    %cst_21 = arith.constant 0.000000e+00 : f32
    %85 = vector.broadcast %cst_21 : f32 to vector<8x64xf32>
    %86 = arith.subf %85, %79 : vector<8x64xf32>
    %87 = arith.select %84, %79, %86 : vector<8x64xi1>, vector<8x64xf32>
    %88 = arith.mulf %72, %87 : vector<8x64xf32>
    %cst_22 = arith.constant -1.000000e+30 : f32
    %89 = vector.shape_cast %37 : vector<8x1xi1> to vector<8x1xi1>
    %90 = vector.broadcast %89 : vector<8x1xi1> to vector<8x64xi1>
    %91 = vector.broadcast %cst_22 : f32 to vector<8x64xf32>
    %92 = arith.select %90, %88, %91 : vector<8x64xi1>, vector<8x64xf32>
    %cst_23 = arith.constant dense<0xFF800000> : vector<64xf32>
    %93 = vector.multi_reduction <maximumf>, %92, %cst_23 [0] : vector<8x64xf32> to vector<64xf32>
    %94 = vector.shape_cast %93 : vector<64xf32> to vector<1x64xf32>
    %95 = tpu.iota {dimensions = array<i32: 0>} : vector<8x64xi32>
    %96 = vector.broadcast %94 : vector<1x64xf32> to vector<8x64xf32>
    %97 = arith.cmpf oeq, %92, %96 : vector<8x64xf32>
    %c8_i32 = arith.constant 8 : i32
    %98 = vector.broadcast %c8_i32 : i32 to vector<8x64xi32>
    %99 = arith.select %97, %95, %98 : vector<8x64xi1>, vector<8x64xi32>
    %cst_24 = arith.constant dense<2147483647> : vector<64xi32>
    %100 = vector.multi_reduction <minsi>, %99, %cst_24 [0] : vector<8x64xi32> to vector<64xi32>
    %101 = vector.shape_cast %100 : vector<64xi32> to vector<1x64xi32>
    %102 = vector.broadcast %101 : vector<1x64xi32> to vector<8x64xi32>
    %103 = arith.cmpi eq, %95, %102 : vector<8x64xi32>
    %104 = arith.extui %103 : vector<8x64xi1> to vector<8x64xi32>
    %105 = arith.sitofp %104 : vector<8x64xi32> to vector<8x64xf32>
    %cst_25 = arith.constant dense<0.000000e+00> : vector<8x64xf32>
    %106 = tpu.matmul %15, %105, %cst_25 {dimension_numbers = #tpu.dot_dimension_numbers<[1], [0], [0], [1], [0, 0, 1, 1], [], []>} : vector<8x8xf32>, vector<8x64xf32>, vector<8x64xf32> -> vector<8x64xf32>
    %107 = vector.extract_strided_slice %106 {offsets = [0, 0], sizes = [1, 64], strides = [1, 1]} : vector<8x64xf32> to vector<1x64xf32>
    %108 = vector.extract_strided_slice %106 {offsets = [1, 0], sizes = [1, 64], strides = [1, 1]} : vector<8x64xf32> to vector<1x64xf32>
    %109 = vector.extract_strided_slice %106 {offsets = [2, 0], sizes = [1, 64], strides = [1, 1]} : vector<8x64xf32> to vector<1x64xf32>
    %110 = vector.extract_strided_slice %106 {offsets = [3, 0], sizes = [1, 64], strides = [1, 1]} : vector<8x64xf32> to vector<1x64xf32>
    %111 = vector.extract_strided_slice %106 {offsets = [4, 0], sizes = [1, 64], strides = [1, 1]} : vector<8x64xf32> to vector<1x64xf32>
    %112 = vector.extract_strided_slice %106 {offsets = [6, 0], sizes = [1, 64], strides = [1, 1]} : vector<8x64xf32> to vector<1x64xf32>
    %113 = vector.extract_strided_slice %106 {offsets = [7, 0], sizes = [1, 64], strides = [1, 1]} : vector<8x64xf32> to vector<1x64xf32>
    %cst_26 = arith.constant 5.000000e-01 : f32
    %114 = vector.broadcast %cst_26 : f32 to vector<1x64xf32>
    %115 = arith.cmpf oge, %94, %114 : vector<1x64xf32>
    %116 = arith.andi %115, %43 : vector<1x64xi1>
    %cst_27 = arith.constant 4.000000e-01 : f32
    %117 = vector.broadcast %cst_27 : f32 to vector<1x64xf32>
    %118 = arith.cmpf olt, %94, %117 : vector<1x64xf32>
    %cst_28 = arith.constant 1.000000e+00 : f32
    %cst_29 = arith.constant 0.000000e+00 : f32
    %119 = vector.broadcast %cst_28 : f32 to vector<1x64xf32>
    %120 = vector.broadcast %cst_29 : f32 to vector<1x64xf32>
    %121 = arith.select %116, %119, %120 : vector<1x64xi1>, vector<1x64xf32>
    %122 = vector.shape_cast %121 : vector<1x64xf32> to vector<1x1x64xf32>
    %cst_30 = arith.constant dense<0.000000e+00> : vector<1xf32>
    %123 = vector.multi_reduction <add>, %122, %cst_30 [1, 2] : vector<1x1x64xf32> to vector<1xf32>
    %124 = vector.shape_cast %123 : vector<1xf32> to vector<1x1x1xf32>
    %125 = vector.extract %124[0, 0, 0] : f32 from vector<1x1x1xf32>
    %126 = arith.fptosi %111 : vector<1x64xf32> to vector<1x64xi32>
    %127 = tpu.iota {dimensions = array<i32: 0>} : vector<8x64xi32>
    %128 = vector.broadcast %126 : vector<1x64xi32> to vector<8x64xi32>
    %129 = arith.cmpi eq, %127, %128 : vector<8x64xi32>
    %130 = vector.broadcast %116 : vector<1x64xi1> to vector<8x64xi1>
    %131 = arith.andi %130, %129 : vector<8x64xi1>
    %132 = arith.ori %116, %118 : vector<1x64xi1>
    %133 = arith.andi %132, %43 : vector<1x64xi1>
    %cst_31 = arith.constant 1.000000e+00 : f32
    %134 = vector.broadcast %cst_31 : f32 to vector<8x64xf32>
    %135 = arith.subf %134, %8 : vector<8x64xf32>
    %136 = arith.select %131, %8, %135 : vector<8x64xi1>, vector<8x64xf32>
    %cst_32 = arith.constant 2.500000e-01 : f32
    %cst_33 = arith.constant 7.500000e-01 : f32
    %137 = vector.broadcast %cst_32 : f32 to vector<8x64xf32>
    %138 = vector.broadcast %cst_33 : f32 to vector<8x64xf32>
    %139 = arith.select %131, %137, %138 : vector<8x64xi1>, vector<8x64xf32>
    %cst_34 = arith.constant 1.000000e+00 : f32
    %140 = vector.broadcast %cst_34 : f32 to vector<8x64xf32>
    %141 = arith.subf %140, %136 : vector<8x64xf32>
    %142 = arith.mulf %139, %141 : vector<8x64xf32>
    %143 = arith.mulf %142, %141 : vector<8x64xf32>
    %144 = math.log %136 : vector<8x64xf32>
    %cst_35 = arith.constant 0.000000e+00 : f32
    %145 = vector.broadcast %cst_35 : f32 to vector<8x64xf32>
    %146 = arith.subf %145, %144 : vector<8x64xf32>
    %147 = arith.mulf %143, %146 : vector<8x64xf32>
    %cst_36 = arith.constant 0.000000e+00 : f32
    %148 = vector.shape_cast %133 : vector<1x64xi1> to vector<1x64xi1>
    %149 = vector.broadcast %148 : vector<1x64xi1> to vector<8x64xi1>
    %150 = vector.broadcast %cst_36 : f32 to vector<8x64xf32>
    %151 = arith.select %149, %147, %150 : vector<8x64xi1>, vector<8x64xf32>
    %152 = vector.shape_cast %151 : vector<8x64xf32> to vector<1x8x64xf32>
    %cst_37 = arith.constant dense<0.000000e+00> : vector<1xf32>
    %153 = vector.multi_reduction <add>, %152, %cst_37 [1, 2] : vector<1x8x64xf32> to vector<1xf32>
    %154 = vector.shape_cast %153 : vector<1xf32> to vector<1x1x1xf32>
    %155 = vector.extract %154[0, 0, 0] : f32 from vector<1x1x1xf32>
    %156 = arith.subf %109, %107 : vector<1x64xf32>
    %157 = arith.subf %110, %108 : vector<1x64xf32>
    %cst_38 = arith.constant 5.000000e-01 : f32
    %158 = vector.broadcast %cst_38 : f32 to vector<1x64xf32>
    %159 = arith.mulf %158, %156 : vector<1x64xf32>
    %160 = arith.addf %107, %159 : vector<1x64xf32>
    %cst_39 = arith.constant 5.000000e-01 : f32
    %161 = vector.broadcast %cst_39 : f32 to vector<1x64xf32>
    %162 = arith.mulf %161, %157 : vector<1x64xf32>
    %163 = arith.addf %108, %162 : vector<1x64xf32>
    %cst_40 = arith.constant 1.000000e+00 : f32
    %164 = vector.broadcast %cst_40 : f32 to vector<1x64xf32>
    %165 = arith.maximumf %156, %164 : vector<1x64xf32>
    %cst_41 = arith.constant 1.000000e+00 : f32
    %166 = vector.broadcast %cst_41 : f32 to vector<1x64xf32>
    %167 = arith.maximumf %157, %166 : vector<1x64xf32>
    %168 = arith.subf %160, %21 : vector<1x64xf32>
    %169 = arith.mulf %168, %26 : vector<1x64xf32>
    %cst_42 = arith.constant 1.000000e+01 : f32
    %170 = vector.broadcast %cst_42 : f32 to vector<1x64xf32>
    %171 = arith.mulf %169, %170 : vector<1x64xf32>
    %172 = arith.subf %163, %22 : vector<1x64xf32>
    %173 = arith.mulf %172, %27 : vector<1x64xf32>
    %cst_43 = arith.constant 1.000000e+01 : f32
    %174 = vector.broadcast %cst_43 : f32 to vector<1x64xf32>
    %175 = arith.mulf %173, %174 : vector<1x64xf32>
    %176 = arith.mulf %165, %26 : vector<1x64xf32>
    %177 = math.log %176 : vector<1x64xf32>
    %cst_44 = arith.constant 5.000000e+00 : f32
    %178 = vector.broadcast %cst_44 : f32 to vector<1x64xf32>
    %179 = arith.mulf %177, %178 : vector<1x64xf32>
    %180 = arith.mulf %167, %27 : vector<1x64xf32>
    %181 = math.log %180 : vector<1x64xf32>
    %cst_45 = arith.constant 5.000000e+00 : f32
    %182 = vector.broadcast %cst_45 : f32 to vector<1x64xf32>
    %183 = arith.mulf %181, %182 : vector<1x64xf32>
    %184 = arith.mulf %112, %25 : vector<1x64xf32>
    %185 = arith.mulf %113, %24 : vector<1x64xf32>
    %186 = arith.subf %184, %185 : vector<1x64xf32>
    %187 = arith.mulf %113, %25 : vector<1x64xf32>
    %188 = arith.mulf %112, %24 : vector<1x64xf32>
    %189 = arith.addf %187, %188 : vector<1x64xf32>
    %190 = arith.divf %186, %189 : vector<1x64xf32>
    %191 = vector.extract_strided_slice %10 {offsets = [0, 0], sizes = [1, 64], strides = [1, 1]} : vector<5x64xf32> to vector<1x64xf32>
    %192 = arith.subf %171, %191 : vector<1x64xf32>
    %193 = math.absf %192 : vector<1x64xf32>
    %cst_46 = arith.constant 0.111111112 : f32
    %194 = vector.broadcast %cst_46 : f32 to vector<1x64xf32>
    %195 = arith.cmpf ole, %193, %194 : vector<1x64xf32>
    %cst_47 = arith.constant 4.500000e+00 : f32
    %196 = vector.broadcast %cst_47 : f32 to vector<1x64xf32>
    %197 = arith.mulf %196, %193 : vector<1x64xf32>
    %198 = arith.mulf %197, %193 : vector<1x64xf32>
    %cst_48 = arith.constant 0.055555556 : f32
    %199 = vector.broadcast %cst_48 : f32 to vector<1x64xf32>
    %200 = arith.subf %193, %199 : vector<1x64xf32>
    %201 = arith.select %195, %198, %200 : vector<1x64xi1>, vector<1x64xf32>
    %cst_49 = arith.constant 0.000000e+00 : f32
    %202 = vector.broadcast %cst_49 : f32 to vector<1x64xf32>
    %203 = arith.select %116, %201, %202 : vector<1x64xi1>, vector<1x64xf32>
    %204 = vector.shape_cast %203 : vector<1x64xf32> to vector<1x1x64xf32>
    %cst_50 = arith.constant dense<0.000000e+00> : vector<1xf32>
    %205 = vector.multi_reduction <add>, %204, %cst_50 [1, 2] : vector<1x1x64xf32> to vector<1xf32>
    %206 = vector.shape_cast %205 : vector<1xf32> to vector<1x1x1xf32>
    %207 = vector.extract %206[0, 0, 0] : f32 from vector<1x1x1xf32>
    %208 = vector.extract_strided_slice %10 {offsets = [1, 0], sizes = [1, 64], strides = [1, 1]} : vector<5x64xf32> to vector<1x64xf32>
    %209 = arith.subf %175, %208 : vector<1x64xf32>
    %210 = math.absf %209 : vector<1x64xf32>
    %cst_51 = arith.constant 0.111111112 : f32
    %211 = vector.broadcast %cst_51 : f32 to vector<1x64xf32>
    %212 = arith.cmpf ole, %210, %211 : vector<1x64xf32>
    %cst_52 = arith.constant 4.500000e+00 : f32
    %213 = vector.broadcast %cst_52 : f32 to vector<1x64xf32>
    %214 = arith.mulf %213, %210 : vector<1x64xf32>
    %215 = arith.mulf %214, %210 : vector<1x64xf32>
    %cst_53 = arith.constant 0.055555556 : f32
    %216 = vector.broadcast %cst_53 : f32 to vector<1x64xf32>
    %217 = arith.subf %210, %216 : vector<1x64xf32>
    %218 = arith.select %212, %215, %217 : vector<1x64xi1>, vector<1x64xf32>
    %cst_54 = arith.constant 0.000000e+00 : f32
    %219 = vector.broadcast %cst_54 : f32 to vector<1x64xf32>
    %220 = arith.select %116, %218, %219 : vector<1x64xi1>, vector<1x64xf32>
    %221 = vector.shape_cast %220 : vector<1x64xf32> to vector<1x1x64xf32>
    %cst_55 = arith.constant dense<0.000000e+00> : vector<1xf32>
    %222 = vector.multi_reduction <add>, %221, %cst_55 [1, 2] : vector<1x1x64xf32> to vector<1xf32>
    %223 = vector.shape_cast %222 : vector<1xf32> to vector<1x1x1xf32>
    %224 = vector.extract %223[0, 0, 0] : f32 from vector<1x1x1xf32>
    %225 = arith.addf %207, %224 : f32
    %226 = vector.extract_strided_slice %10 {offsets = [2, 0], sizes = [1, 64], strides = [1, 1]} : vector<5x64xf32> to vector<1x64xf32>
    %227 = arith.subf %179, %226 : vector<1x64xf32>
    %228 = math.absf %227 : vector<1x64xf32>
    %cst_56 = arith.constant 0.111111112 : f32
    %229 = vector.broadcast %cst_56 : f32 to vector<1x64xf32>
    %230 = arith.cmpf ole, %228, %229 : vector<1x64xf32>
    %cst_57 = arith.constant 4.500000e+00 : f32
    %231 = vector.broadcast %cst_57 : f32 to vector<1x64xf32>
    %232 = arith.mulf %231, %228 : vector<1x64xf32>
    %233 = arith.mulf %232, %228 : vector<1x64xf32>
    %cst_58 = arith.constant 0.055555556 : f32
    %234 = vector.broadcast %cst_58 : f32 to vector<1x64xf32>
    %235 = arith.subf %228, %234 : vector<1x64xf32>
    %236 = arith.select %230, %233, %235 : vector<1x64xi1>, vector<1x64xf32>
    %cst_59 = arith.constant 0.000000e+00 : f32
    %237 = vector.broadcast %cst_59 : f32 to vector<1x64xf32>
    %238 = arith.select %116, %236, %237 : vector<1x64xi1>, vector<1x64xf32>
    %239 = vector.shape_cast %238 : vector<1x64xf32> to vector<1x1x64xf32>
    %cst_60 = arith.constant dense<0.000000e+00> : vector<1xf32>
    %240 = vector.multi_reduction <add>, %239, %cst_60 [1, 2] : vector<1x1x64xf32> to vector<1xf32>
    %241 = vector.shape_cast %240 : vector<1xf32> to vector<1x1x1xf32>
    %242 = vector.extract %241[0, 0, 0] : f32 from vector<1x1x1xf32>
    %243 = arith.addf %225, %242 : f32
    %244 = vector.extract_strided_slice %10 {offsets = [3, 0], sizes = [1, 64], strides = [1, 1]} : vector<5x64xf32> to vector<1x64xf32>
    %245 = arith.subf %183, %244 : vector<1x64xf32>
    %246 = math.absf %245 : vector<1x64xf32>
    %cst_61 = arith.constant 0.111111112 : f32
    %247 = vector.broadcast %cst_61 : f32 to vector<1x64xf32>
    %248 = arith.cmpf ole, %246, %247 : vector<1x64xf32>
    %cst_62 = arith.constant 4.500000e+00 : f32
    %249 = vector.broadcast %cst_62 : f32 to vector<1x64xf32>
    %250 = arith.mulf %249, %246 : vector<1x64xf32>
    %251 = arith.mulf %250, %246 : vector<1x64xf32>
    %cst_63 = arith.constant 0.055555556 : f32
    %252 = vector.broadcast %cst_63 : f32 to vector<1x64xf32>
    %253 = arith.subf %246, %252 : vector<1x64xf32>
    %254 = arith.select %248, %251, %253 : vector<1x64xi1>, vector<1x64xf32>
    %cst_64 = arith.constant 0.000000e+00 : f32
    %255 = vector.broadcast %cst_64 : f32 to vector<1x64xf32>
    %256 = arith.select %116, %254, %255 : vector<1x64xi1>, vector<1x64xf32>
    %257 = vector.shape_cast %256 : vector<1x64xf32> to vector<1x1x64xf32>
    %cst_65 = arith.constant dense<0.000000e+00> : vector<1xf32>
    %258 = vector.multi_reduction <add>, %257, %cst_65 [1, 2] : vector<1x1x64xf32> to vector<1xf32>
    %259 = vector.shape_cast %258 : vector<1xf32> to vector<1x1x1xf32>
    %260 = vector.extract %259[0, 0, 0] : f32 from vector<1x1x1xf32>
    %261 = arith.addf %243, %260 : f32
    %262 = vector.extract_strided_slice %10 {offsets = [4, 0], sizes = [1, 64], strides = [1, 1]} : vector<5x64xf32> to vector<1x64xf32>
    %263 = arith.subf %190, %262 : vector<1x64xf32>
    %264 = math.absf %263 : vector<1x64xf32>
    %cst_66 = arith.constant 0.111111112 : f32
    %265 = vector.broadcast %cst_66 : f32 to vector<1x64xf32>
    %266 = arith.cmpf ole, %264, %265 : vector<1x64xf32>
    %cst_67 = arith.constant 4.500000e+00 : f32
    %267 = vector.broadcast %cst_67 : f32 to vector<1x64xf32>
    %268 = arith.mulf %267, %264 : vector<1x64xf32>
    %269 = arith.mulf %268, %264 : vector<1x64xf32>
    %cst_68 = arith.constant 0.055555556 : f32
    %270 = vector.broadcast %cst_68 : f32 to vector<1x64xf32>
    %271 = arith.subf %264, %270 : vector<1x64xf32>
    %272 = arith.select %266, %269, %271 : vector<1x64xi1>, vector<1x64xf32>
    %cst_69 = arith.constant 0.000000e+00 : f32
    %273 = vector.broadcast %cst_69 : f32 to vector<1x64xf32>
    %274 = arith.select %116, %272, %273 : vector<1x64xi1>, vector<1x64xf32>
    %275 = vector.shape_cast %274 : vector<1x64xf32> to vector<1x1x64xf32>
    %cst_70 = arith.constant dense<0.000000e+00> : vector<1xf32>
    %276 = vector.multi_reduction <add>, %275, %cst_70 [1, 2] : vector<1x1x64xf32> to vector<1xf32>
    %277 = vector.shape_cast %276 : vector<1xf32> to vector<1x1x1xf32>
    %278 = vector.extract %277[0, 0, 0] : f32 from vector<1x1x1xf32>
    %279 = arith.addf %261, %278 : f32
    %280 = tpu.iota {dimensions = array<i32: 0>} : vector<3x128xi32>
    %c0_71 = arith.constant 0 : index
    %c0_72 = arith.constant 0 : index
    %281 = vector.load %arg8[%c0_71, %c0_72] : memref<3x128xf32, #tpu.memory_space<vmem>>, vector<3x128xf32>
    %c0_i32_73 = arith.constant 0 : i32
    %282 = vector.broadcast %c0_i32_73 : i32 to vector<3x128xi32>
    %283 = arith.cmpi eq, %280, %282 : vector<3x128xi32>
    %c1_i32 = arith.constant 1 : i32
    %284 = vector.broadcast %c1_i32 : i32 to vector<3x128xi32>
    %285 = arith.cmpi eq, %280, %284 : vector<3x128xi32>
    %286 = vector.broadcast %155 : f32 to vector<3x128xf32>
    %287 = vector.broadcast %279 : f32 to vector<3x128xf32>
    %288 = arith.select %285, %286, %287 : vector<3x128xi1>, vector<3x128xf32>
    %289 = vector.broadcast %125 : f32 to vector<3x128xf32>
    %290 = arith.select %283, %289, %288 : vector<3x128xi1>, vector<3x128xf32>
    %291 = arith.addf %281, %290 : vector<3x128xf32>
    %c0_74 = arith.constant 0 : index
    %c0_75 = arith.constant 0 : index
    %292 = vector.load %arg8[%c0_74, %c0_75] : memref<3x128xf32, #tpu.memory_space<vmem>>, vector<3x128xf32>
    tpu.vector_store %arg8[%c0_74, %c0_75], %291 {strides = array<i32>} : memref<3x128xf32, #tpu.memory_space<vmem>>, vector<3x128xf32>,
    %c0_i32_76 = arith.constant 0 : i32
    %293 = arith.cmpi eq, %arg1, %c0_i32_76 : i32
    %294 = arith.extui %293 : i1 to i32
    %c0_i32_77 = arith.constant 0 : i32
    %295 = arith.cmpi ne, %294, %c0_i32_77 : i32
    scf.if %295 {
      %c0_78 = arith.constant 0 : index
      %c0_79 = arith.constant 0 : index
      %296 = vector.load %arg8[%c0_78, %c0_79] : memref<3x128xf32, #tpu.memory_space<vmem>>, vector<3x128xf32>
      %297 = vector.extract_strided_slice %296 {offsets = [0, 0], sizes = [1, 128], strides = [1, 1]} : vector<3x128xf32> to vector<1x128xf32>
      %298 = vector.extract_strided_slice %296 {offsets = [1, 0], sizes = [1, 128], strides = [1, 1]} : vector<3x128xf32> to vector<1x128xf32>
      %299 = vector.extract_strided_slice %296 {offsets = [2, 0], sizes = [1, 128], strides = [1, 1]} : vector<3x128xf32> to vector<1x128xf32>
      %cst_80 = arith.constant 1.000000e+00 : f32
      %cst_81 = arith.constant 0.000000e+00 : f32
      %300 = vector.broadcast %cst_80 : f32 to vector<8x1xf32>
      %301 = vector.broadcast %cst_81 : f32 to vector<8x1xf32>
      %302 = arith.select %37, %300, %301 : vector<8x1xi1>, vector<8x1xf32>
      %303 = vector.shape_cast %302 : vector<8x1xf32> to vector<1x8x1xf32>
      %cst_82 = arith.constant dense<0.000000e+00> : vector<1xf32>
      %304 = vector.multi_reduction <add>, %303, %cst_82 [1, 2] : vector<1x8x1xf32> to vector<1xf32>
      %305 = vector.shape_cast %304 : vector<1xf32> to vector<1x1x1xf32>
      %306 = vector.extract %305[0, 0, 0] : f32 from vector<1x1x1xf32>
      %cst_83 = arith.constant 0.000000e+00 : f32
      %307 = arith.cmpf ogt, %306, %cst_83 : f32
      %cst_84 = arith.constant 1.000000e+00 : f32
      %308 = vector.broadcast %cst_84 : f32 to vector<1x128xf32>
      %309 = arith.maximumf %297, %308 : vector<1x128xf32>
      %310 = arith.divf %298, %309 : vector<1x128xf32>
      %cst_85 = arith.constant 0.000000e+00 : f32
      %311 = vector.broadcast %cst_85 : f32 to vector<1x128xf32>
      %312 = arith.cmpf ogt, %297, %311 : vector<1x128xf32>
      %cst_86 = arith.constant 5.000000e+00 : f32
      %313 = vector.broadcast %cst_86 : f32 to vector<1x128xf32>
      %314 = arith.mulf %297, %313 : vector<1x128xf32>
      %cst_87 = arith.constant 1.000000e+00 : f32
      %315 = vector.broadcast %cst_87 : f32 to vector<1x128xf32>
      %316 = arith.maximumf %314, %315 : vector<1x128xf32>
      %317 = arith.divf %299, %316 : vector<1x128xf32>
      %cst_88 = arith.constant 0.000000e+00 : f32
      %318 = vector.broadcast %cst_88 : f32 to vector<1x128xf32>
      %319 = arith.select %312, %317, %318 : vector<1x128xi1>, vector<1x128xf32>
      %cst_89 = arith.constant 0.000000e+00 : f32
      %320 = vector.broadcast %cst_89 : f32 to vector<1x128xf32>
      %321 = arith.select %307, %310, %320 : vector<1x128xf32>
      %cst_90 = arith.constant 0.000000e+00 : f32
      %322 = vector.broadcast %cst_90 : f32 to vector<1x128xf32>
      %323 = arith.select %307, %319, %322 : vector<1x128xf32>
      %324 = tpu.iota {dimensions = array<i32: 1>} : vector<1x2x128xi32>
      %c0_i32_91 = arith.constant 0 : i32
      %325 = vector.broadcast %c0_i32_91 : i32 to vector<1x2x128xi32>
      %326 = arith.cmpi eq, %324, %325 : vector<1x2x128xi32>
      %327 = vector.shape_cast %321 : vector<1x128xf32> to vector<1x1x128xf32>
      %328 = vector.broadcast %327 : vector<1x1x128xf32> to vector<1x2x128xf32>
      %329 = vector.shape_cast %323 : vector<1x128xf32> to vector<1x1x128xf32>
      %330 = vector.broadcast %329 : vector<1x1x128xf32> to vector<1x2x128xf32>
      %331 = arith.select %326, %328, %330 : vector<1x2x128xi1>, vector<1x2x128xf32>
      %c0_92 = arith.constant 0 : index
      %c0_93 = arith.constant 0 : index
      %c0_94 = arith.constant 0 : index
      %332 = vector.load %arg7[%c0_92, %c0_93, %c0_94] : memref<1x2x128xf32, #tpu.memory_space<vmem>>, vector<1x2x128xf32>
      tpu.vector_store %arg7[%c0_92, %c0_93, %c0_94], %331 {strides = array<i32>} : memref<1x2x128xf32, #tpu.memory_space<vmem>>, vector<1x2x128xf32>,
    } else {
    }
    return
  }
  func.func @transform_0(%arg0: i32, %arg1: i32) -> (i32, i32, i32) {
    %c0_i32 = arith.constant 0 : i32
    %c0_i32_0 = arith.constant 0 : i32
    return %arg0, %c0_i32, %arg1 : i32, i32, i32
  }
  func.func @transform_1(%arg0: i32, %arg1: i32) -> (i32, i32, i32) {
    %c0_i32 = arith.constant 0 : i32
    %c0_i32_0 = arith.constant 0 : i32
    return %arg0, %c0_i32, %arg1 : i32, i32, i32
  }
  func.func @transform_2(%arg0: i32, %arg1: i32) -> (i32, i32) {
    %c0_i32 = arith.constant 0 : i32
    %c0_i32_0 = arith.constant 0 : i32
    return %c0_i32, %arg1 : i32, i32
  }
  func.func @transform_3(%arg0: i32, %arg1: i32) -> (i32, i32, i32) {
    %c0_i32 = arith.constant 0 : i32
    %c0_i32_0 = arith.constant 0 : i32
    %c0_i32_1 = arith.constant 0 : i32
    return %arg0, %c0_i32, %c0_i32_0 : i32, i32, i32
  }
  func.func @transform_4(%arg0: i32, %arg1: i32) -> (i32, i32, i32) {
    %c0_i32 = arith.constant 0 : i32
    %c0_i32_0 = arith.constant 0 : i32
    %c0_i32_1 = arith.constant 0 : i32
    return %arg0, %c0_i32, %c0_i32_0 : i32, i32, i32
  }
  func.func @transform_5(%arg0: i32, %arg1: i32) -> (i32, i32, i32) {
    %c0_i32 = arith.constant 0 : i32
    %c0_i32_0 = arith.constant 0 : i32
    %c0_i32_1 = arith.constant 0 : i32
    return %arg0, %c0_i32, %c0_i32_0 : i32, i32, i32
  }
}

</mosaic_0001>

<bundles_post_ra>
// kernel: tpu_custom_call.1
= control target key start
LH: loop header
LB: loop body
LE: loop exit
PB: predicated region body
PF: predicated region fallthrough
CT: control target
= control target key end

     0   :  { %10 = vsyncpa [#allocation4], 0  ;;  %s1683_s0 = inlined_call_operand.vmem [shape: f32[2,8,64], index: 0, kind: input, shape index: {}]   ;;  %s1684_s1 = inlined_call_operand.vmem [shape: f32[2,5,64], index: 1, kind: input, shape index: {}]   ;;  %s1685_s2 = inlined_call_operand.vmem [shape: f32[12,64], index: 2, kind: input, shape index: {}]   ;;  %s1686_s3 = inlined_call_operand.hbm [shape: f32[2,8,8], index: 3, kind: input, shape index: {}]   ;;  %s1687_s4 = inlined_call_operand.hbm [shape: f32[2,8,8], index: 4, kind: input, shape index: {}]   ;;  %s1688_s5 = inlined_call_operand.hbm [shape: f32[2,2,128], index: 5, kind: output, shape index: {}]  }
   0x1   :  { %12 = vsyncpa [#allocation4 + $0x1], 0 }
   0x2   :  { %13 = vsyncpa [#allocation7], 0 }
   0x3   :  { %15 = vsyncpa [#allocation7 + $0x1], 0 }
   0x4   :  { %16 = vsyncpa [#allocation5], 0 }
   0x5   :  { %18 = vsyncpa [#allocation5 + $0x1], 0  ;;  %s1341_s18 = smov 0   ;;  %s1343_s19 = smov 0  }
   0x6   :  { %s1345_s20 = smov 0   ;;  %s1347_s21 = smov 0  }
   0x7   :  { %s1349_s22 = smov 0   ;;  %s1351_s23 = smov 0  }
   0x8 LB: > { %s992_s24 = sadd.s32 4294967295, %s1291_s23   ;;  %s993_s25 = sadd.s32 4294967294, %s1291_s23   ;;  %s1291_s23 = sphi %s1351_s23, %s24_s23   ;;  %s1287_s22 = sphi %s1349_s22, %s1714_s22   ;;  %s1283_s21 = sphi %s1347_s21, %s1713_s21   ;;  %s1279_s20 = sphi %s1345_s20, %s1712_s20   ;;  %s1275_s19 = sphi %s1343_s19, %s1711_s19   ;;  %s1271_s18 = sphi %s1341_s18, %s1710_s18  }
   0x9   : > { %s36_s26 = sadd.s32 1, %s1287_s22  ;;  %s125_s27 = sadd.s32 1, %s1279_s20 }
   0xa   : > { %p38_p0 = scmp.ge.s32.totalorder %s36_s26, 2  ;;  %p132_p1 = scmp.ne.s32.totalorder %s1279_s20, %s1275_s19 }
   0xb   : > { %p133_p2 = scmp.eq.s32.totalorder %s1291_s23, 0  ;;  %p138_p3 = scmp.ne.s32.totalorder %s1275_s19, %s1271_s18 }
   0xc   : > { %s1716_s26 = smov (%p38_p0, %s36_s26), 0  ;;  %p139_p5 = scmp.eq.s32.totalorder %s992_s24, 0 }
   0xd   : > { %p1382_p4 = por %p133_p2, %p132_p1  ;;  %s122_s29 = ssub.s32 %s1287_s22, %s1716_s26 }
   0xe   : > { %p188_p6 = scmp.eq.s32.totalorder %s992_s24, 1  ;;  %p123_p7 = scmp.eq.s32.totalorder %s122_s29, 0 }
   0xf   : > { %p1388_p8 = por %p139_p5, %p138_p3  ;;  %p194_p10 = scmp.eq.s32.totalorder %s993_s25, 1 }
  0x10   : > { %p1392_p9 = por %p188_p6, %p132_p1  ;;  %p1059_p13 = scmp.lt.s32.totalorder %s1291_s23, 2 }
  0x11   : > { %s1692_s30 = scalar_select %p1388_p8, 1, 0 }
  0x12   : > { %s1693_s6 = scalar_select %p1392_p9, 1, 0 }
  0x13   : > { %s1397_s7 = scalar_select %p123_p7, %s1279_s20, %s125_s27  }
  0x14   : > { %p1399_p11 = por %p194_p10, %p138_p3  ;;  %s1406_s9 = sand.u32 1, %s1279_s20  }
  0x15   : > { %s997_s10 = sshll.u32 %s1406_s9, 3  ;;  %s998_s11 = sshll.u32 %s1287_s22, 7 }
  0x16   : > { %s1694_s8 = scalar_select %p1399_p11, 1, 0 }
  0x17   : > { %s1415_s14 = scalar_lea.hbm %s1686_s3, %s998_s11  ;;  %s245_s15 = scalar_lea.vmem [#allocation3], %s997_s10 }
  0x18   : > { %s252_s16 = sshll.u32 %s245_s15, 4  ;;  %p1423_p0 = pnand %p1059_p13, %p1382_p4  ;;  %s1419_s16 = int_to_ptr.vmem [resolvable:$true] %s252_s16 }
  0x19   : > { %s242_s24 = scalar_lea.sflag [#allocation4], %s1406_s9  ;;  %s1145_s25 = scalar_lea.hbm %s1415_s14, 128 }
  0x1a   : > { %p1146_p3 = scmp.ne.s32.totalorder %s1415_s14, %s1145_s25  ;;  %p1147_p5 = pneg %p1423_p0 }
  0x1b   : > { %s1150_s28 = scalar_lea.hbm %s1686_s3, 256  ;;  %p1151_p4 = scmp.lt.u32.totalorder %s1415_s14, %s1686_s3 }
  0x1c   : > { %p1148_p6 = pnand %p1147_p5, %p1146_p3  ;;  %p1152_p10 = scmp.lt.u32.totalorder %s1150_s28, %s1145_s25 }
  0x1d   : > { %p1154_p12 = scmp.lt.u32.totalorder %s1145_s25, %s1415_s14 }
  0x1e   : > { %p1149_p7 = pneg %p1148_p6  ;;  %p1153_p13 = por %p1152_p10, %p1151_p4 }
  0x20   : > { %p1155_p1 = por %p1154_p12, %p1153_p13 }
  0x22   : > { %p1156_p2 = pnand %p1155_p1, %p1149_p7 }
  0x24   : > { %1159 = shalt.err (!%p1156_p2)
}
  0x25   : > { %s1160_s15 = scalar_lea.vmem %s1419_s16, 128  ;;  %s1293_s27 = smov [#allocation3]  }
  0x26   : > { %p1161_p3 = scmp.ne.s32.totalorder %s1419_s16, %s1160_s15  ;;  %s1165_s29 = sshll.u32 %s1293_s27, 4  ;;  %s1166_s29 = int_to_ptr.vmem [resolvable:$false] %s1165_s29 }
  0x27   : > { %s1167_s12 = scalar_lea.vmem %s1166_s29, 256  ;;  %p1168_p9 = scmp.lt.s32.totalorder %s1419_s16, %s1166_s29 }
  0x28   : > { %p1163_p6 = pnand %p1161_p3, %p1147_p5  ;;  %p1169_p4 = scmp.lt.s32.totalorder %s1167_s12, %s1160_s15 }
  0x2a   : > { %p1164_p11 = pneg %p1163_p6  ;;  %p1170_p10 = por %p1169_p4, %p1168_p9 }
  0x2c   : > { %p1171_p12 = pnand %p1170_p10, %p1164_p11 }
  0x2e   : > { %1174 = shalt.err (!%p1171_p12)
}
  0x2f   : > { %1051 = dma.hbm_to_vmem [thread:$0]  (!%p1423_p0), %s1415_s14, 128, %s1419_s16, %s242_s24  }
  0x30   : > { %p1696_p1 = scmp.lt.s32.totalorder %s1291_s23, 3  ;;  %p1697_p2 = scmp.ge.s32.totalorder %s1291_s23, 1 }
  0x31   : > { %s1468_s15 = scalar_lea.hbm %s1687_s4, %s998_s11  ;;  %s263_s27 = scalar_lea.vmem [#allocation6], %s997_s10 }
  0x32   : > { %p1459_p7 = pnand %p1697_p2, %p1696_p1  ;;  %s270_s29 = sshll.u32 %s263_s27, 4  ;;  %s271_s29 = int_to_ptr.vmem [resolvable:$true] %s270_s29 }
  0x33   : > { %s260_s14 = scalar_lea.sflag [#allocation7], %s1406_s9  ;;  %s1175_s16 = scalar_lea.hbm %s1468_s15, 128 }
  0x34   : > { %s1698_s25 = scalar_select %p1459_p7, 1, 0 }
  0x35   : > { %p1176_p9 = scmp.ne.s32.totalorder %s1468_s15, %s1175_s16  ;;  %s1180_s11 = scalar_lea.hbm %s1687_s4, 256 }
  0x36   : > { %p1181_p3 = scmp.lt.u32.totalorder %s1468_s15, %s1687_s4  ;;  %p1182_p6 = scmp.lt.u32.totalorder %s1180_s11, %s1175_s16 }
  0x37   : > { %p1178_p11 = pnand %p1176_p9, %p1147_p5  ;;  %p1184_p10 = scmp.lt.u32.totalorder %s1175_s16, %s1468_s15 }
  0x38   : > { %p1183_p4 = por %p1182_p6, %p1181_p3 }
  0x39   : > { %p1179_p13 = pneg %p1178_p11 }
  0x3a   : > { %p1185_p12 = por %p1184_p10, %p1183_p4 }
  0x3c   : > { %p1186_p1 = pnand %p1185_p12, %p1179_p13 }
  0x3e   : > { %1189 = shalt.err (!%p1186_p1)
}
  0x3f   : > { %s1190_s9 = scalar_lea.vmem %s271_s29, 128  ;;  %s1294_s10 = smov [#allocation6]  }
  0x40   : > { %p1191_p2 = scmp.ne.s32.totalorder %s271_s29, %s1190_s9  ;;  %s1195_s27 = sshll.u32 %s1294_s10, 4  ;;  %s1196_s27 = int_to_ptr.vmem [resolvable:$false] %s1195_s27 }
  0x41   : > { %s1197_s24 = scalar_lea.vmem %s1196_s27, 256  ;;  %p1198_p8 = scmp.lt.s32.totalorder %s271_s29, %s1196_s27 }
  0x42   : > { %p1193_p9 = pnand %p1191_p2, %p1147_p5  ;;  %p1199_p7 = scmp.lt.s32.totalorder %s1197_s24, %s1190_s9 }
  0x44   : > { %p1194_p11 = pneg %p1193_p9  ;;  %p1200_p3 = por %p1199_p7, %p1198_p8 }
  0x46   : > { %p1201_p6 = pnand %p1200_p3, %p1194_p11 }
  0x48   : > { %1204 = shalt.err (!%p1201_p6)
}
  0x49   : > { %1054 = dma.hbm_to_vmem [thread:$0]  (!%p1423_p0), %s1468_s15, 128, %s271_s29, %s260_s14  }
  0x4a   : > { %p1699_p13 = scmp.ne.s32.totalorder %s1698_s25, 0 }
  0x4b   : > { %s1495_s16 = sand.u32 (!%p1699_p13), 1, %s1275_s19   ;;  %p1700_p5 = scmp.ne.s32.totalorder (!%p1699_p13), %s1692_s30, 0 }
  0x4c   : > { %279 = sbr.rel (%p1699_p13) target bundleno = 1013 (0x3f5), region = 40  ;;  %s1002_s12 = sshll.u32 (!%p1699_p13), %s1495_s16, 3 }
  0x4d   : > { %s282_s11 = scalar_lea.sflag (!%p1699_p13), [#allocation4], %s1495_s16  ;;  %s285_s28 = scalar_lea.vmem (!%p1699_p13), [#allocation3], %s1002_s12 }
  0x53   : > { %1258 = dma.done.wait (%p1700_p5), %s282_s11, 128  }
  0x54   : > { %1260 = vsyncadd (%p1700_p5), %s282_s11, 4294967168  ;;  %s291_s17 = scalar_lea.sflag [#allocation7], %s1495_s16  ;;  %s1504_s15 = scalar_lea.vmem [#allocation6], %s1002_s12 }
  0x55   : > { %1262 = dma.done.wait (%p1700_p5), %s291_s17, 128  }
  0x56   : > { %1264 = vsyncadd (%p1700_p5), %s291_s17, 4294967168  ;;  %v1295_v0 = vmov 2   ;;  %v1296_v1 = vmov 3   ;;  %v373_v2 = vld [vmem:[%s285_s28] sm:$0xff]  ;;  %s1297_s25 = smov 2   ;;  %v1298_v3 = vmov 0   ;;  %v376_v16 = vlaneseq }
  0x57   : > { %1124 = vset.pattern.permute.xlu1 %v1295_v0  ;;  %1126 = vset.pattern.permute.xlu0 %v1296_v1  ;;  %v1299_v4 = vmov 1   ;;  %s1300_s29 = smov 127   ;;  %v1301_v7 = vmov 7   ;;  %vm375_vm0 = vcmp.ne.f32.partialorder %v373_v2, -1.0  ;;  %v1302_v9 = vmov 5   ;;  %s1306_s30 = smov 123  }
  0x58   : > { %383 = vrot.lane.b32.xlu0 %v373_v2, %s1297_s25  ;;  %397 = vperm.xlu1 %1124, %v373_v2   ;;  %v479_v8 = vsel %vm375_vm0, 1, %v1298_v3  ;;  %v1303_v12 = vmov 0.0   ;;  %v1304_v13 = vmov 6   ;;  %v1305_v14 = vmov 4   ;;  %v1529_v24 = vld [vmem:[%s1685_s2] sm:$0xff]  ;;  %p344_p8 = scmp.lt.s32.totalorder %s1283_s21, 1 }
  0x59   : > { %366 = vst [vmem:[#allocation2] sm:$0x7] %v1303_v12  ;;  %1019 = vmatprep.subr.mxu0 %v1303_v12  ;;  %v782_v15 = vsel %vm375_vm0, 1.0, %v1303_v12  ;;  %vm1307_vm1 = vmmov 0   ;;  %v1516_v18 = vshrl.u32 %v376_v16, 7  ;;  %vm485_vm4 = vcmask 523264  }
  0x5a   : > { %1021 = vmatprep.mubr.msk.f32.mxu0 %vm1307_vm1, %v1303_v12  ;;  %v1542_v42 = vld [vmem:[%s1685_s2 + $0x8] sm:$0xf]  ;;  %vm588_vm8 = vcmask 516096   ;;  %vm510_vm0 = vcmask 64512   ;;  %s1575_s27 = scalar_select %p344_p8, %s1283_s21, 1 }
  0x5b   : > { %v394_v20 = vsub.s32 2, %v1516_v18  ;;  %v1520_v21 = vsub.s32 0, %v1516_v18  ;;  %v1523_v22 = vsub.s32 1, %v1516_v18  ;;  %v414_v23 = vsub.s32 3, %v1516_v18  ;;  %p1707_p4 = scmp.ne.s32.totalorder %s1693_s6, 0 }
  0x5c   : > { %1125 = vset.pattern.permute.xlu1 %v1298_v3  ;;  %v435_v37 = vsub.s32 7, %v1516_v18  ;;  %v468_v49 = vsub.s32 4, %v1516_v18  ;;  %s1005_s24 = sshll.u32 %s1575_s27, 3 }
  0x5d   : > { %406 = vperm.xlu1 %1125, %v373_v2   ;;  %v395_v25 = vrot.slane %v1529_v24, %v394_v20  ;;  %v404_v26 = vrot.slane %v1529_v24, %v1520_v21  ;;  %v424_v27 = vrot.slane %v1529_v24, %v1523_v22  ;;  %v415_v28 = vrot.slane %v1529_v24, %v414_v23  ;;  %s350_s28 = scalar_lea.vmem %s1683_s0, %s1005_s24  ;;  %s357_s25 = scalar_lea.vmem %s1684_s1, %s1005_s24 }
  0x5e   : > { %v436_v40 = vrot.slane %v1529_v24, %v435_v37  ;;  %v459_v46 = vrot.slane %v1542_v42, %v1523_v22  ;;  %v450_v47 = vrot.slane %v1542_v42, %v1520_v21  ;;  %v469_v54 = vrot.slane %v1529_v24, %v468_v49 }
  0x61   : > { %1127 = vset.pattern.permute.xlu1 %v1299_v4 }
  0x62   : > { %426 = vperm.xlu1 %1127, %v373_v2  }
  0x66   : > { %1128 = vset.pattern.permute.xlu1 %v1295_v0 }
  0xca   : > { %v384_v5 = vpop.permute.xlu0 %383 }
  0xcb   : > { %v386_v6 = vsub.f32 %v373_v2, %v384_v5 }
  0xcd   : > { %388 = vrot.lane.b32.xlu0 %v386_v6, %s1300_s29 }
  0xd1   : > { %417 = vperm.xlu0 %1126, %v373_v2  }
  0xd5   : > { %1129 = vset.pattern.permute.xlu0 %v1301_v7 }
  0xd6   : > { %452 = vperm.xlu0 %1129, %v373_v2  }
  0xd7   : > { %v398_v17 = vpop.permute.xlu1 %397 }
  0xd8   : > { %v400_v31 = vmin.f32 %v395_v25, %v398_v17 }
  0xda   : > { %1132 = vset.pattern.permute.xlu0 %v1302_v9 }
  0xdb   : > { %481 = vperm.xlu0 %1132, %v479_v8  }
  0xdc   : > { %v407_v19 = vpop.permute.xlu1 %406 }
  0xdd   : > { %v409_v32 = vmax.f32 %v404_v26, %v407_v19  ;;  %v1308_v26 = vmov 1.0  }
  0xdf   : > { %v410_v35 = vsub.f32 %v400_v31, %v409_v32 }
  0xe1   : > { %v427_v29 = vpop.permute.xlu1 %426  ;;  %v411_v38 = vmax.f32 %v410_v35, 0.0  ;;  %v367_v35 = vld [vmem:[%s350_s28] sm:$0xff] }
  0xe2   : > { %v429_v33 = vmax.f32 %v424_v27, %v427_v29  ;;  %v368_v37 = vmax.f32 %v367_v35, 0.0001 }
 0x13f   : > { %v389_v10 = vpop.permute.xlu0 %388 }
 0x140   : > { %v391_v11 = vmul.f32 %v389_v10, %v386_v6  ;;  %v377_v6 = vand.u32 127, %v376_v16 }
 0x142   : > { %439 = vperm.xlu1 %1128, %v391_v11   ;;  %vm381_vm5 = vcmp.lt.s32.totalorder %v377_v6, 64 }
 0x146   : > { %1130 = vset.pattern.permute.xlu1 %v1304_v13 }
 0x147   : > { %461 = vperm.xlu1 %1130, %v373_v2  }
 0x14b   : > { %1131 = vset.pattern.permute.xlu1 %v1305_v14 }
 0x14c   : > { %471 = vperm.xlu1 %1131, %v373_v2  }
 0x150   : > { %784 = vrot.lane.b32.xlu1 %v782_v15, %s1306_s30  ;;  %v418_v30 = vpop.permute.xlu0 %417 }
 0x151   : > { %v420_v34 = vmin.f32 %v415_v28, %v418_v30 }
 0x153   : > { %v430_v36 = vsub.f32 %v420_v34, %v429_v33 }
 0x155   : > { %v431_v39 = vmax.f32 %v430_v36, 0.0  ;;  %v453_v48 = vpop.permute.xlu0 %452  ;;  %v648_v36 = vrot.slane %v1542_v42, 2 }
 0x156   : > { %v455_v53 = vmul.f32 %v453_v48, %v450_v47 }
 0x157   : > { %v432_v43 = vmul.f32 %v431_v39, %v411_v38 }
 0x15a   : > { %v482_v59 = vpop.permute.xlu0 %481 }
 0x15b   : > { %vm483_vm3 = vcmp.eq.s32.totalorder %v482_v59, 1 }
 0x1c1   : > { %v440_v41 = vpop.permute.xlu1 %439 }
 0x1c2   : > { %v442_v44 = vadd.f32 %v440_v41, %v436_v40 }
 0x1c4   : > { %v443_v45 = vsub.f32 %v442_v44, %v432_v43 }
 0x1c6   : > { %v444_v50 = vmax.f32 %v443_v45, 1e-08  ;;  %v462_v51 = vpop.permute.xlu1 %461 }
 0x1c7   : > { %v464_v52 = vmul.f32 %v462_v51, %v459_v46 }
 0x1c8   : > { %1133 = vrcp.f32 %v444_v50 }
 0x1c9   : > { %v465_v56 = vsub.f32 %v455_v53, %v464_v52  ;;  %v659_v52 = vrot.slane %v1542_v42, 1 }
 0x1cb   : > { %v472_v55 = vpop.permute.xlu1 %471  ;;  %v476_v58 = vsub.f32 0.0, %v465_v56 }
 0x1cc   : > { %v474_v57 = vsub.f32 %v469_v54, %v472_v55 }
 0x1ce   : > { %vm475_vm2 = vcmp.ge.f32.partialorder %v474_v57, 0.0 }
 0x1cf   : > { %v477_v62 = vsel %vm475_vm2, %v465_v56, %v476_v58  ;;  %v1571_v27 = vpop.permute.xlu1 %784  ;;  %v644_v56 = vrot.slane %v1529_v24, 5  ;;  %v656_v24 = vrot.slane %v1542_v42, 3 }
 0x1d2   : > { %v1134_v60 = vpop.eup %1133 }
 0x1d3   : > { %v446_v61 = vmul.f32 %v1134_v60, %v432_v43  ;;  %v369_v43 = vmin.f32 %v368_v37, 0.9999 }
 0x1d5   : > { %v478_v63 = vmul.f32 %v477_v62, %v446_v61  ;;  %v610_v54 = vsub.f32 1.0, %v369_v43 }
 0x1d7   : > { %v484_v0 = vsel %vm483_vm3, %v478_v63, -1e+30 }
 0x1d8   : > { %v486_v1 = vsel %vm485_vm4, %v484_v0, -inf }
 0x1d9   : > { %v487_v2 = vrot.slane %v486_v1, 4 }
 0x1db   : > { %v488_v3 = vmax.f32 %v486_v1, %v487_v2 }
 0x1dd   : > { %v489_v4 = vrot.slane %v488_v3, 2 }
 0x1df   : > { %v490_v5 = vmax.f32 %v488_v3, %v489_v4 }
 0x1e1   : > { %v491_v7 = vrot.slane %v490_v5, 1 }
 0x1e3   : > { %v492_v8 = vmax.f32 %v490_v5, %v491_v7 }
 0x1e5   : > { %vm495_vm6 = vcmp.eq.f32.partialorder %v484_v0, %v492_v8  ;;  %vm584_vm7 = vcmp.ge.f32.partialorder %v492_v8, 0.5  ;;  %vm586_vm9 = vcmp.lt.f32.partialorder %v492_v8, 0.4  ;;  %v370_v0 = vld [vmem:[%s357_s25] sm:$0x1f]  ;;  %s1004_s25 = sshll.u32 %s1495_s16, 1 }
 0x1e6   : > { %v496_v9 = vsel %vm495_vm6, %v1516_v18, 8  ;;  %vm1554_vm10 = vmand %vm584_vm7, %vm381_vm5 }
 0x1e7   : > { %v497_v11 = vsel %vm485_vm4, %v496_v9, 2147483647  ;;  %v587_v13 = vsel %vm1554_vm10, 1.0, %v1303_v12  ;;  %vm608_vm11 = vmor %vm1554_vm10, %vm586_vm9  ;;  %v374_v12 = vld [vmem:[%s1504_s15] sm:$0xff]  ;;  %v1309_v9 = vmov 0.75   ;;  %vm787_vm9 = vcmask 7168  }
 0x1e8   : > { %v498_v14 = vrot.slane %v497_v11, 4  ;;  %v589_v15 = vsel %vm588_vm8, %v587_v13, 0.0  ;;  %vm1565_vm12 = vmand %vm608_vm11, %vm381_vm5  ;;  %v744_v13 = vrot.slane %v370_v0, 6 }
 0x1e9   : > { %590 = vadd.xlane.f32.xlu1 %v589_v15 }
 0x1ea   : > { %vm499_vm13 = vcmp.lt.s32.totalorder %v497_v11, %v498_v14 }
 0x1eb   : > { %v500_v17 = vsel %vm499_vm13, %v497_v11, %v498_v14 }
 0x1ec   : > { %v501_v19 = vrot.slane %v500_v17, 2 }
 0x1ee   : > { %vm502_vm14 = vcmp.lt.s32.totalorder %v500_v17, %v501_v19 }
 0x1ef   : > { %v503_v20 = vsel %vm502_vm14, %v500_v17, %v501_v19 }
 0x1f0   : > { %v504_v23 = vrot.slane %v503_v20, 1 }
 0x1f2   : > { %vm505_vm15 = vcmp.lt.s32.totalorder %v503_v20, %v504_v23 }
 0x1f3   : > { %v506_v25 = vsel %vm505_vm15, %v503_v20, %v504_v23 }
 0x1f4   : > { %vm507_vm1 = vcmp.eq.s32.totalorder %v1516_v18, %v506_v25 }
 0x1f5   : > { %1020 = vmatpush3.msk.msra.mxu0 %vm507_vm1, %v1308_v26 }
 0x1f6   : > { %1022 = vmatmul.mubr.msk.f32.vlgmr.msra.gmra.mrb[0].mxu0 %vm510_vm0, %v374_v12 }
 0x276   : > { %v591_v28 = vpop.xlane.xlu1 %590 }
 0x277   : > { %v592_v29 = vrot.slane %v591_v28, 4 }
 0x279   : > { %v593_v30 = vadd.f32 %v592_v29, %v591_v28 }
 0x27b   : > { %v594_v31 = vrot.slane %v593_v30, 2 }
 0x27d   : > { %v595_v32 = vadd.f32 %v594_v31, %v593_v30 }
 0x27f   : > { %v596_v33 = vrot.slane %v595_v32, 1 }
 0x281   : > { %v597_v34 = vadd.f32 %v596_v33, %v595_v32 }
 0x283   : > { %1024 = vpush %v597_v34 }
 0x2b4   : > { %s1025_s29 = spop %1024 }
 0x2c9   : > { %v580_v38 = vpop.f32.mrb[0].mxu0 }
 0x2ca   : > { %v634_v39 = vrot.slane %v580_v38, 6  ;;  %v666_v40 = vmul.f32 %v648_v36, %v580_v38  ;;  %v1023_v41 = vpop.f32.mrb[1].mxu0  ;;  %v1026_v44 = vtrunc.f32 %v580_v38  ;;  %v661_v62 = vmul.f32 %v659_v52, %v580_v38 }
 0x2cb   : > { %v658_v4 = vmul.f32 %v656_v24, %v580_v38 }
 0x2cc   : > { %v636_v45 = vsub.f32 %v580_v38, %v634_v39  ;;  %v668_v46 = vrot.slane %v666_v40, 7  ;;  %v1027_v47 = vcvt.f32.s32 %v1026_v44  ;;  %v663_v1 = vrot.slane %v661_v62, 1 }
 0x2ce   : > { %v637_v48 = vmul.f32 0.5, %v636_v45  ;;  %v642_v50 = vmax.f32 %v636_v45, 1.0  ;;  %v670_v51 = vadd.f32 %v668_v46, %v666_v40  ;;  %v603_v53 = vrot.slane %v1027_v47, %v468_v49 }
 0x2cf   : > { %v665_v7 = vsub.f32 %v658_v4, %v663_v1 }
 0x2d0   : > { %v639_v55 = vrot.slane %v637_v48, 2  ;;  %v652_v57 = vmul.f32 %v642_v50, %v1542_v42  ;;  %v672_v58 = vrot.slane %v670_v51, 1  ;;  %vm604_vm2 = vcmp.eq.s32.totalorder %v1516_v18, %v603_v53 }
 0x2d1   : > { %vm1592_vm3 = vmand %vm1554_vm10, %vm604_vm2 }
 0x2d2   : > { %v641_v59 = vadd.f32 %v639_v55, %v580_v38  ;;  %1135 = vlog2.f32 %v652_v57  ;;  %v611_v49 = vsel %vm1592_vm3, %v369_v43, %v610_v54  ;;  %v612_v11 = vsel %vm1592_vm3, 0.25, %v1309_v9 }
 0x2d3   : > { %1137 = vrcp.f32 %v672_v58  ;;  %v613_v3 = vsub.f32 1.0, %v611_v49  ;;  %v788_v58 = vsel %vm787_vm9, %v1571_v27, 0.0 }
 0x2d4   : > { %v646_v61 = vsub.f32 %v641_v59, %v644_v56  ;;  %1139 = vlog2.f32 %v611_v49 }
 0x2d5   : > { %v614_v15 = vmul.f32 %v613_v3, %v612_v11 }
 0x2d6   : > { %v650_v63 = vmul.f32 %v648_v36, %v646_v61 }
 0x2d7   : > { %v615_v29 = vmul.f32 %v614_v15, %v613_v3 }
 0x2d8   : > { %v651_v2 = vmul.f32 10.0, %v650_v63 }
 0x2da   : > { %v676_v5 = vsub.f32 %v651_v2, %v370_v0 }
 0x2dc   : > { %v1136_v6 = vpop.eup %1135  ;;  %v677_v8 = vand.u32 2147483647, %v676_v5 }
 0x2dd   : > { %v1138_v14 = vpop.eup %1137  ;;  %v654_v17 = vmul.f32 0.6931472, %v1136_v6 }
 0x2de   : > { %v1140_v19 = vpop.eup %1139  ;;  %v679_v42 = vmul.f32 4.5, %v677_v8  ;;  %v675_v20 = vmul.f32 %v1138_v14, %v665_v7  ;;  %v1010_v26 = vadd.f32 -0.055555556, %v677_v8  ;;  %vm678_vm5 = vcmp.le.f32.partialorder %v677_v8, 0.11111111 }
 0x2df   : > { %v617_v23 = vmul.f32 0.6931472, %v1140_v19  ;;  %v655_v25 = vmul.f32 5.0, %v654_v17 }
 0x2e0   : > { %v680_v12 = vmul.f32 %v679_v42, %v677_v8  ;;  %v746_v28 = vsub.f32 %v675_v20, %v744_v13 }
 0x2e1   : > { %v618_v30 = vsub.f32 0.0, %v617_v23  ;;  %v708_v31 = vsub.f32 %v655_v25, %v370_v0 }
 0x2e2   : > { %v682_v32 = vsel %vm678_vm5, %v680_v12, %v1010_v26  ;;  %v747_v33 = vand.u32 2147483647, %v746_v28 }
 0x2e3   : > { %v683_v34 = vsel %vm1554_vm10, %v682_v32, 0.0  ;;  %v619_v35 = vmul.f32 %v618_v30, %v615_v29  ;;  %v709_v36 = vand.u32 2147483647, %v708_v31 }
 0x2e4   : > { %v684_v37 = vsel %vm588_vm8, %v683_v34, 0.0  ;;  %v695_v38 = vrot.slane %v683_v34, 1  ;;  %v749_v39 = vmul.f32 4.5, %v747_v33  ;;  %v1012_v45 = vadd.f32 -0.055555556, %v747_v33 }
 0x2e5   : > { %685 = vadd.xlane.f32.xlu0 %v684_v37  ;;  %v622_v40 = vsel %vm1565_vm12, %v619_v35, 0.0  ;;  %v711_v41 = vmul.f32 4.5, %v709_v36  ;;  %v1011_v47 = vadd.f32 -0.055555556, %v709_v36  ;;  %vm748_vm6 = vcmp.le.f32.partialorder %v747_v33, 0.11111111 }
 0x2e6   : > { %v697_v43 = vsel %vm588_vm8, %v695_v38, 0.0  ;;  %v750_v44 = vmul.f32 %v749_v39, %v747_v33  ;;  %v623_v48 = vsel %vm485_vm4, %v622_v40, 0.0  ;;  %vm710_vm7 = vcmp.le.f32.partialorder %v709_v36, 0.11111111 }
 0x2e7   : > { %698 = vadd.xlane.f32.xlu1 %v697_v43  ;;  %v712_v46 = vmul.f32 %v711_v41, %v709_v36  ;;  %vm770_vm4 = vcmp.eq.s32.totalorder %v1516_v18, 1 }
 0x2e8   : > { %v752_v50 = vsel %vm748_vm6, %v750_v44, %v1012_v45 }
 0x2e9   : > { %624 = vadd.xlane.f32.xlu0 %v623_v48  ;;  %v714_v51 = vsel %vm710_vm7, %v712_v46, %v1011_v47  ;;  %v753_v16 = vsel %vm1554_vm10, %v752_v50, 0.0  ;;  %v768_v50 = vld [vmem:[#allocation2] sm:$0x7] }
 0x2ea   : > { %v715_v52 = vsel %vm1554_vm10, %v714_v51, 0.0  ;;  %v755_v57 = vrot.slane %v753_v16, 6 }
 0x2eb   : > { %v730_v53 = vrot.slane %v715_v52, 3  ;;  %v717_v54 = vrot.slane %v715_v52, 2  ;;  %v774_v52 = vstv %s1025_s29  ;;  %s1014_s29 = sshll.u32 %s1283_s21, 5  ;;  %s833_s21 = scalar_lea.sflag [#allocation5], %s1495_s16 }
 0x2ec   : > { %v757_v59 = vsel %vm588_vm8, %v755_v57, 0.0 }
 0x2ed   : > { %v732_v55 = vsel %vm588_vm8, %v730_v53, 0.0  ;;  %v719_v56 = vsel %vm588_vm8, %v717_v54, 0.0  ;;  %vm769_vm8 = vcmp.eq.s32.totalorder %v1516_v18, 0 }
 0x2ee   : > { %733 = vadd.xlane.f32.xlu1 %v732_v55  ;;  %720 = vadd.xlane.f32.xlu0 %v719_v56 }
 0x2f2   : > { %758 = vadd.xlane.f32.xlu0 %v757_v59  ;;  %789 = vadd.xlane.f32.xlu1 %v788_v58 }
 0x372   : > { %v686_v60 = vpop.xlane.xlu0 %685 }
 0x373   : > { %v687_v49 = vrot.slane %v686_v60, 4 }
 0x374   : > { %v699_v10 = vpop.xlane.xlu1 %698 }
 0x375   : > { %v688_v61 = vadd.f32 %v687_v49, %v686_v60  ;;  %v700_v62 = vrot.slane %v699_v10, 4 }
 0x376   : > { %v625_v24 = vpop.xlane.xlu0 %624 }
 0x377   : > { %v689_v63 = vrot.slane %v688_v61, 2  ;;  %v701_v0 = vadd.f32 %v700_v62, %v699_v10  ;;  %v626_v1 = vrot.slane %v625_v24, 4 }
 0x379   : > { %v702_v2 = vrot.slane %v701_v0, 2  ;;  %v627_v3 = vadd.f32 %v626_v1, %v625_v24  ;;  %v690_v4 = vadd.f32 %v689_v63, %v688_v61 }
 0x37b   : > { %v628_v5 = vrot.slane %v627_v3, 2  ;;  %v734_v6 = vpop.xlane.xlu1 %733  ;;  %v721_v7 = vpop.xlane.xlu0 %720  ;;  %v703_v27 = vadd.f32 %v702_v2, %v701_v0  ;;  %v691_v13 = vrot.slane %v690_v4, 1 }
 0x37c   : > { %v735_v8 = vrot.slane %v734_v6, 4  ;;  %v722_v9 = vrot.slane %v721_v7, 4 }
 0x37d   : > { %v629_v11 = vadd.f32 %v628_v5, %v627_v3  ;;  %v704_v42 = vrot.slane %v703_v27, 1  ;;  %v692_v29 = vadd.f32 %v691_v13, %v690_v4 }
 0x37e   : > { %v736_v14 = vadd.f32 %v735_v8, %v734_v6  ;;  %v723_v15 = vadd.f32 %v722_v9, %v721_v7 }
 0x37f   : > { %v759_v17 = vpop.xlane.xlu0 %758  ;;  %v630_v19 = vrot.slane %v629_v11, 1  ;;  %v790_v20 = vpop.xlane.xlu1 %789  ;;  %v705_v34 = vadd.f32 %v704_v42, %v703_v27 }
 0x380   : > { %v737_v23 = vrot.slane %v736_v14, 2  ;;  %v724_v25 = vrot.slane %v723_v15, 2  ;;  %v760_v12 = vrot.slane %v759_v17, 4  ;;  %v791_v26 = vrot.slane %v790_v20, 4 }
 0x381   : > { %v631_v28 = vadd.f32 %v630_v19, %v629_v11 }
 0x382   : > { %v761_v30 = vadd.f32 %v760_v12, %v759_v17  ;;  %v725_v31 = vadd.f32 %v724_v25, %v723_v15  ;;  %v738_v32 = vadd.f32 %v737_v23, %v736_v14  ;;  %v792_v33 = vadd.f32 %v791_v26, %v790_v20 }
 0x383   : > { %1028 = vpush %v631_v28 }
 0x384   : > { %v762_v35 = vrot.slane %v761_v30, 2  ;;  %1030 = vpush %v692_v29  ;;  %v726_v36 = vrot.slane %v725_v31, 1  ;;  %v739_v37 = vrot.slane %v738_v32, 1  ;;  %v793_v38 = vrot.slane %v792_v33, 2 }
 0x385   : > { %1032 = vpush %v705_v34 }
 0x386   : > { %v763_v39 = vadd.f32 %v762_v35, %v761_v30  ;;  %v727_v40 = vadd.f32 %v726_v36, %v725_v31  ;;  %v740_v41 = vadd.f32 %v739_v37, %v738_v32  ;;  %v794_v43 = vadd.f32 %v793_v38, %v792_v33 }
 0x388   : > { %1034 = vpush %v727_v40  ;;  %v764_v44 = vrot.slane %v763_v39, 1  ;;  %v795_v45 = vrot.slane %v794_v43, 1 }
 0x389   : > { %1036 = vpush %v740_v41 }
 0x38a   : > { %v765_v46 = vadd.f32 %v764_v44, %v763_v39  ;;  %v796_v47 = vadd.f32 %v795_v45, %v794_v43 }
 0x38c   : > { %1038 = vpush %v765_v46 }
 0x38d   : > { %1040 = vpush %v796_v47 }
 0x3b4   : > { %s1029_s30 = spop %1028 }
 0x3b5   : > { %s1031_s14 = spop %1030  ;;  %v771_v48 = vstv %s1029_s30  ;;  %s343_s30 = scalar_lea.vmem [#allocation8], %s1004_s25 }
 0x3b6   : > { %s1033_s13 = spop %1032 }
 0x3b7   : > { %s707_s9 = sadd.f32 %s1033_s13, %s1031_s14  ;;  %s846_s14 = sshll.u32 %s343_s30, 4  ;;  %s1634_s14 = int_to_ptr.vmem [resolvable:$true] %s846_s14 }
 0x3b9   : > { %s1035_s10 = spop %1034 }
 0x3ba   : > { %s729_s27 = sadd.f32 %s1035_s10, %s707_s9  ;;  %s1037_s24 = spop %1036 }
 0x3bb   : > { %s1632_s10 = scalar_lea.hbm %s1688_s5, %s1014_s29 }
 0x3bc   : > { %s742_s12 = sadd.f32 %s1037_s24, %s729_s27  ;;  %s1205_s27 = scalar_lea.vmem %s1634_s14, 32 }
 0x3bd   : > { %s1039_s11 = spop %1038  ;;  %p1206_p7 = scmp.ne.s32.totalorder %s1634_s14, %s1205_s27 }
 0x3be   : > { %s767_s28 = sadd.f32 %s1039_s11, %s742_s12  ;;  %s1041_s17 = spop %1040 }
 0x3bf   : > { %p798_p0 = scmp.gt.f32.partialorder %s1041_s17, 0.0  ;;  %p1207_p10 = pnand %p1206_p7, %p1707_p4 }
 0x3c0   : > { %v772_v51 = vstv %s767_s28  ;;  %s1310_s24 = smov [#allocation8]  }
 0x3c1   : > { %v773_v16 = vsel %vm770_vm4, %v771_v48, %v772_v51  ;;  %s817_s15 = scalar_select %p798_p0, 1, 0 }
 0x3c2   : > { %v775_v53 = vsel %vm769_vm8, %v774_v52, %v773_v16  ;;  %p1208_p12 = pneg %p1207_p10  ;;  %s1209_s12 = sshll.u32 %s1310_s24, 4  ;;  %s1210_s12 = int_to_ptr.vmem [resolvable:$false] %s1209_s12 }
 0x3c3   : > { %v776_v54 = vadd.f32 %v775_v53, %v768_v50  ;;  %v818_v10 = vstv %s817_s15  ;;  %s1211_s11 = scalar_lea.vmem %s1210_s12, 64  ;;  %p1212_p1 = scmp.lt.s32.totalorder %s1634_s14, %s1210_s12 }
 0x3c4   : > { %vm819_vm10 = vcmp.eq.s32.totalorder %v818_v10, 1  ;;  %p1213_p2 = scmp.lt.s32.totalorder %s1211_s11, %s1205_s27 }
 0x3c5   : > { %777 = vst [vmem:[#allocation2] sm:$0x7] %v776_v54 }
 0x3c6   : > { %p1214_p9 = por %p1213_p2, %p1212_p1 }
 0x3c8   : > { %p1215_p11 = pnand %p1214_p9, %p1208_p12 }
 0x3cc   : > { %v781_v55 = vld [vmem:[#allocation2] sm:$0x7] }
 0x3cd   : > { %v799_v56 = vmax.f32 %v781_v55, 1.0  ;;  %v806_v57 = vmul.f32 5.0, %v781_v55  ;;  %vm805_vm11 = vcmp.gt.f32.partialorder %v781_v55, 0.0 }
 0x3cf   : > { %v801_v58 = vrot.slane %v799_v56, 7  ;;  %v807_v59 = vmax.f32 %v806_v57, 1.0 }
 0x3d1   : > { %1141 = vrcp.f32 %v801_v58  ;;  %v809_v60 = vrot.slane %v807_v59, 6 }
 0x3d3   : > { %1143 = vrcp.f32 %v809_v60 }
 0x3db   : > { %v1142_v49 = vpop.eup %1141 }
 0x3dc   : > { %v804_v62 = vmul.f32 %v1142_v49, %v781_v55 }
 0x3dd   : > { %v1144_v61 = vpop.eup %1143 }
 0x3de   : > { %v812_v24 = vmul.f32 %v1144_v61, %v781_v55  ;;  %v820_v0 = vsel %vm819_vm10, %v804_v62, 0.0 }
 0x3df   : > { %v825_v3 = vrot.slane %v820_v0, %v1523_v22 }
 0x3e0   : > { %v814_v63 = vrot.slane %v812_v24, 2 }
 0x3e2   : > { %v816_v1 = vsel %vm805_vm11, %v814_v63, 0.0 }
 0x3e3   : > { %v821_v2 = vsel %vm819_vm10, %v816_v1, 0.0 }
 0x3e4   : > { %v829_v4 = vrot.slane %v821_v2, %v1520_v21 }
 0x3e6   : > { %v830_v5 = vsel %vm769_vm8, %v825_v3, %v829_v4 }
 0x3e7   : > { %831 = vst [vmem:[%s343_s30] sm:$0x3] %v830_v5 }
 0x3e8   : > { %1218 = shalt.err (!%p1215_p11)
}
 0x3e9   : > { %s1219_s16 = scalar_lea.hbm %s1632_s10, 32  ;;  %s1223_s15 = scalar_lea.hbm %s1688_s5, 64 }
 0x3ea   : > { %p1220_p3 = scmp.ne.s32.totalorder %s1632_s10, %s1219_s16  ;;  %p1224_p5 = scmp.lt.u32.totalorder %s1632_s10, %s1688_s5 }
 0x3eb   : > { %p1225_p8 = scmp.lt.u32.totalorder %s1223_s15, %s1219_s16  ;;  %p1227_p7 = scmp.lt.u32.totalorder %s1219_s16, %s1632_s10 }
 0x3ec   : > { %p1221_p6 = pnand %p1220_p3, %p1707_p4 }
 0x3ed   : > { %p1226_p0 = por %p1225_p8, %p1224_p5 }
 0x3ee   : > { %p1222_p13 = pneg %p1221_p6 }
 0x3ef   : > { %p1228_p10 = por %p1227_p7, %p1226_p0 }
 0x3f1   : > { %p1229_p12 = pnand %p1228_p10, %p1222_p13 }
 0x3f3   : > { %1232 = shalt.err (!%p1229_p12)
}
 0x3f4   : > { %1046 = dma.vmem_to_hbm [thread:$0]  (%p1707_p4), %s1634_s14, 32, %s1632_s10, %s833_s21  }
 0x3f5 PF: > { %s858_s30 = sand.u32 1, %s1271_s18   ;;  %p1708_p1 = scmp.ne.s32.totalorder %s1694_s8, 0 }
 0x3f6   : > { %p1709_p2 = scmp.ge.s32.totalorder %s1291_s23, 2  ;;  %s859_s13 = scalar_lea.sflag [#allocation5], %s858_s30 }
 0x3f8   : > { %p1056_p9 = pnand %p1709_p2, %p1708_p1 }
 0x3fa   : > { %1266 = dma.done.wait (!%p1056_p9), %s859_s13, 32  }
 0x3fb   : > { %1268 = vsyncadd (!%p1056_p9), %s859_s13, 4294967264  ;;  %s24_s23 = sadd.s32 1, %s1291_s23   ;;  %s1710_s18 = smov %s1275_s19 }
 0x3fc   : > { %p21_p11 = scmp.ge.s32.totalorder %s24_s23, 4   ;;  %s1711_s19 = smov %s1279_s20 }
 0x3fd   : > { %s1712_s20 = smov %s1397_s7  ;;  %s1713_s21 = smov %s1287_s22 }
 0x3fe   : > { %s1714_s22 = smov %s1716_s26  ;;  %23 = sbr.rel (!%p21_p11) target bundleno = 8 (0x8), region = 115 }
 0x405   :  { %864 = vsyncpa [#allocation4], 1 }
 0x406   :  { %866 = vsyncpa [#allocation4 + $0x1], 1 }
 0x407   :  { %867 = vsyncpa [#allocation7], 1 }
 0x408   :  { %869 = vsyncpa [#allocation7 + $0x1], 1 }
 0x409   :  { %870 = vsyncpa [#allocation5], 1 }
 0x40a   :  { %872 = vsyncpa [#allocation5 + $0x1], 1 }

</bundles_post_ra>
